<compile_context>
chip_gen: v5e
topology: v5e:2x2
jax: 0.10.0
libtpu: 0.0.40
codegen_flags: <defaults>
</compile_context>

<pallas_src>
import functools

import numpy as np

import jax
import jax.numpy as jnp
from jax.experimental import pallas as pl
from jax.experimental.pallas import tpu as pltpu


def _round_up(n, m):
    return ((n + m - 1) // m) * m


@functools.lru_cache(maxsize=1)
def _vmem_budget_bytes():
    """Per-generation scoped-VMEM budget (leave headroom under physical VMEM)."""
    phys = 64 * 2 ** 20                       # conservative default (v7x per-TC)
    try:
        info = pltpu.get_tpu_info()
        phys = int(getattr(info, "vmem_capacity_bytes", 0) or phys)
    except Exception:
        pass
    # 128 MiB (v5e/v6e) -> ~100 MiB; 64 MiB (v7x) -> ~48 MiB.
    return int(max(phys - 28 * 2 ** 20, (phys * 3) // 4))


# -----------------------------------------------------------------------------
# Shared per-layer gate / cell math (gates are f32, lane-aligned i|f|g|o blocks).
# -----------------------------------------------------------------------------
def _gates_to_hc(gates, c_prev, hp):
    i_g = jax.nn.sigmoid(gates[:, 0 * hp:1 * hp])
    f_g = jax.nn.sigmoid(gates[:, 1 * hp:2 * hp])
    g_g = jnp.tanh(gates[:, 2 * hp:3 * hp])
    o_g = jax.nn.sigmoid(gates[:, 3 * hp:4 * hp])
    c_new = f_g * c_prev + i_g * g_g
    h_new = o_g * jnp.tanh(c_new)
    return h_new, c_new


# -----------------------------------------------------------------------------
# Streaming kernel: one grid step == one LSTMCell layer. The input-feeding carry
# lives in a persistent VMEM scratch slab [x | h] (bf16); weights are
# double-buffered per layer by the Pallas pipeline; bias is resident.
# -----------------------------------------------------------------------------
def _stacked_lstm_stream_kernel(x_ref, h0_ref, c0_ref, w_ref, b_ref,
                                h1_ref, c1_ref, xh_ref):
    l = pl.program_id(0)
    kx = x_ref.shape[-1]          # padded width of the "input" slot
    hp = h0_ref.shape[-1]         # padded hidden width (multiple of 128)

    @pl.when(l == 0)
    def _():
        xh_ref[:, :kx] = x_ref[...]                       # x already in slab dtype

    xh_ref[:, kx:] = h0_ref[...].astype(xh_ref.dtype)     # this layer's h_0

    # Fused MXU matmul: gates = [x | h] @ W_l (bf16 x bf16 -> f32 accumulate).
    gates = jnp.dot(xh_ref[...], w_ref[...], preferred_element_type=jnp.float32)
    gates = gates + b_ref[l].astype(jnp.float32)          # resident bias, (1, 4*Hp)

    h_new, c_new = _gates_to_hc(gates, c0_ref[...].astype(jnp.float32), hp)
    h1_ref[...] = h_new.astype(h1_ref.dtype)
    c1_ref[...] = c_new.astype(c1_ref.dtype)

    # Input feeding (dropout is identity in eval mode).
    @pl.when(l + 1 < pl.num_programs(0))
    def _():
        xh_ref[:, :hp] = h_new.astype(xh_ref.dtype)


# -----------------------------------------------------------------------------
# Resident kernel: all weights fit VMEM -> single grid step, fully unrolled
# in-kernel layer loop (removes the per-grid-step overhead; stepping stone to an
# in-kernel T loop).
# -----------------------------------------------------------------------------
def _stacked_lstm_resident_kernel(x_ref, h0_ref, c0_ref, w_ref, b_ref,
                                  h1_ref, c1_ref, xh_ref):
    num_layers = h0_ref.shape[0]
    kx = x_ref.shape[-1]
    hp = h0_ref.shape[-1]

    xh_ref[:, :kx] = x_ref[...]
    for l in range(num_layers):                       # static, fully unrolled
        xh_ref[:, kx:] = h0_ref[l].astype(xh_ref.dtype)
        gates = jnp.dot(xh_ref[...], w_ref[l], preferred_element_type=jnp.float32)
        gates = gates + b_ref[l].astype(jnp.float32)
        h_new, c_new = _gates_to_hc(gates, c0_ref[l].astype(jnp.float32), hp)
        h1_ref[l] = h_new.astype(h1_ref.dtype)
        c1_ref[l] = c_new.astype(c1_ref.dtype)
        if l + 1 < num_layers:
            xh_ref[:, :hp] = h_new.astype(xh_ref.dtype)


# -----------------------------------------------------------------------------
# Parameters: PyTorch-style per-layer params + packing into the fused/padded
# kernel layout. Weights are stored in bf16 (MXU input dtype), bias stays f32.
# -----------------------------------------------------------------------------
def init_stacked_lstm_params(key, input_size, hidden_size, layers,
                             dtype=jnp.float32):
    """nn.LSTMCell shapes: W_ih (4H, in), W_hh (4H, H), b_ih/b_hh (4H,)."""
    params = []
    bound = 1.0 / float(hidden_size) ** 0.5
    in_sz = input_size
    for _ in range(layers):
        key, k0, k1, k2, k3 = jax.random.split(key, 5)
        params.append({
            "w_ih": jax.random.uniform(k0, (4 * hidden_size, in_sz), dtype,
                                       minval=-bound, maxval=bound),
            "w_hh": jax.random.uniform(k1, (4 * hidden_size, hidden_size), dtype,
                                       minval=-bound, maxval=bound),
            "b_ih": jax.random.uniform(k2, (4 * hidden_size,), dtype,
                                       minval=-bound, maxval=bound),
            "b_hh": jax.random.uniform(k3, (4 * hidden_size,), dtype,
                                       minval=-bound, maxval=bound),
        })
        in_sz = hidden_size
    return params


def pack_stacked_lstm_params(params, input_size, hidden_size,
                             weight_dtype=jnp.bfloat16):
    """Pack per-layer (W_ih, W_hh, b_ih, b_hh) into one lane-aligned slab:
       w_all: (L, Kx_pad + H_pad, 4*H_pad) in weight_dtype (bf16 by default),
       b_all: (L, 1, 4*H_pad) in f32 (b_ih + b_hh folded)."""
    L = len(params)
    H = hidden_size
    H_pad = _round_up(H, 128)
    Kx_pad = max(_round_up(input_size, 128), H_pad)
    K_total = Kx_pad + H_pad
    G = 4 * H_pad

    w_all = np.zeros((L, K_total, G), np.float32)
    b_all = np.zeros((L, 1, G), np.float32)
    in_sz = input_size
    for l, p in enumerate(params):
        w_ih = np.asarray(p["w_ih"], np.float32)        # (4H, in_sz)
        w_hh = np.asarray(p["w_hh"], np.float32)        # (4H, H)
        bias = np.asarray(p["b_ih"], np.float32) + np.asarray(p["b_hh"], np.float32)
        for k in range(4):
            w_all[l, :in_sz, k * H_pad:k * H_pad + H] = w_ih[k * H:(k + 1) * H, :].T
            w_all[l, Kx_pad:Kx_pad + H, k * H_pad:k * H_pad + H] = \
                w_hh[k * H:(k + 1) * H, :].T
            b_all[l, 0, k * H_pad:k * H_pad + H] = bias[k * H:(k + 1) * H]
        in_sz = H
    return jnp.asarray(w_all, weight_dtype), jnp.asarray(b_all, jnp.float32)


# -----------------------------------------------------------------------------
# Forward wrapper: mirrors StackedLSTM.forward (eval mode: dropout = identity).
# -----------------------------------------------------------------------------
@functools.partial(jax.jit, static_argnames=("hidden_size", "weights_resident"))
def stacked_lstm_forward(x, h_0, c_0, w_all, b_all, *, hidden_size,
                         weights_resident=None):
    """x: (B, input_size); h_0, c_0: (L, B, H).
    Returns (out, (h_1, c_1)) with out = (B, H), h_1/c_1 = (L, B, H)."""
    L, K_total, G = w_all.shape
    H_pad = G // 4
    Kx_pad = K_total - H_pad
    B, in_sz = x.shape
    H = hidden_size
    f32 = jnp.float32
    cdt = w_all.dtype                              # MXU input dtype (bf16)
    act = x.dtype                                  # h output dtype
    c_itemsize = jnp.dtype(cdt).itemsize

    # dtype-aware sublane padding (8 rows f32, 16 rows bf16, 32 rows int8)
    B_pad = _round_up(B, 8 * (4 // c_itemsize))

    # Pad to TPU-friendly shapes. Zeros never leak into the real outputs since
    # padded weight rows/cols and padded c0 lanes are zero.
    x_pad = jnp.zeros((B_pad, Kx_pad), cdt).at[:B, :in_sz].set(x.astype(cdt))
    h0_pad = jnp.zeros((L, B_pad, H_pad), act).at[:, :B, :H].set(h_0.astype(act))
    c0_pad = jnp.zeros((L, B_pad, H_pad), f32).at[:, :B, :H].set(c_0.astype(f32))

    # ---- VMEM budgeting (all trace-time Python ints) -----------------------
    w_block = K_total * G * c_itemsize
    b_bytes = L * G * jnp.dtype(b_all.dtype).itemsize
    x_bytes = B_pad * Kx_pad * c_itemsize
    slab_bytes = B_pad * K_total * c_itemsize
    hc_bytes = B_pad * H_pad * (jnp.dtype(act).itemsize + 4)   # h + c, one layer
    headroom = 2 << 20

    resident_need = (L * w_block + b_bytes + x_bytes + slab_bytes
                     + 2 * L * hc_bytes + headroom)
    stream_need = (2 * w_block + b_bytes + x_bytes + slab_bytes
                   + 4 * hc_bytes + headroom)

    budget = _vmem_budget_bytes()
    if weights_resident is None:
        weights_resident = resident_need <= min(24 * 2 ** 20, budget // 2)

    if weights_resident:
        kernel = _stacked_lstm_resident_kernel
        grid = (1,)
        in_specs = [
            pl.BlockSpec((B_pad, Kx_pad), lambda i: (0, 0)),        # x
            pl.BlockSpec((L, B_pad, H_pad), lambda i: (0, 0, 0)),   # h_0
            pl.BlockSpec((L, B_pad, H_pad), lambda i: (0, 0, 0)),   # c_0
            pl.BlockSpec((L, K_total, G), lambda i: (0, 0, 0)),     # all W
            pl.BlockSpec((L, 1, G), lambda i: (0, 0, 0)),           # all bias
        ]
        out_specs = (
            pl.BlockSpec((L, B_pad, H_pad), lambda i: (0, 0, 0)),
            pl.BlockSpec((L, B_pad, H_pad), lambda i: (0, 0, 0)),
        )
        need = resident_need
    else:
        kernel = _stacked_lstm_stream_kernel
        grid = (L,)
        in_specs = [
            pl.BlockSpec((B_pad, Kx_pad), lambda l: (0, 0)),            # x (resident)
            pl.BlockSpec((None, B_pad, H_pad), lambda l: (l, 0, 0)),    # h_0[l]
            pl.BlockSpec((None, B_pad, H_pad), lambda l: (l, 0, 0)),    # c_0[l]
            pl.BlockSpec((None, K_total, G), lambda l: (l, 0, 0)),      # W_l (streamed)
            pl.BlockSpec((L, 1, G), lambda l: (0, 0, 0)),               # bias (resident)
        ]
        out_specs = (
            pl.BlockSpec((None, B_pad, H_pad), lambda l: (l, 0, 0)),    # h_1[l]
            pl.BlockSpec((None, B_pad, H_pad), lambda l: (l, 0, 0)),    # c_1[l]
        )
        need = stream_need

    vmem_limit = int(min(max(need, 32 * 2 ** 20), budget))

    grid_spec = pltpu.PrefetchScalarGridSpec(
        num_scalar_prefetch=0,
        grid=grid,
        in_specs=in_specs,
        out_specs=out_specs,
        scratch_shapes=[pltpu.VMEM((B_pad, K_total), cdt)],   # [x | h] carry slab
    )

    h1_pad, c1_pad = pl.pallas_call(
        kernel,
        grid_spec=grid_spec,
        out_shape=(
            jax.ShapeDtypeStruct((L, B_pad, H_pad), act),   # h_1 in activation dtype
            jax.ShapeDtypeStruct((L, B_pad, H_pad), f32),   # c kept in f32
        ),
        # Write h_1/c_1 in place over the (padded) h_0/c_0 buffers.
        input_output_aliases={1: 0, 2: 1},
        compiler_params=pltpu.CompilerParams(
            dimension_semantics=("arbitrary",),   # layer/step loop is sequential
            vmem_limit_bytes=vmem_limit,
        ),
    )(x_pad, h0_pad, c0_pad, w_all, b_all)

    h_1 = h1_pad[:, :B, :H]
    c_1 = c1_pad[:, :B, :H].astype(c_0.dtype)
    out = h_1[L - 1]
    return out, (h_1, c_1)


# -----------------------------------------------------------------------------
# Pure-jnp reference emulating the kernel numerics (bf16 matmul inputs, f32
# accumulation / gate math / cell state), unpacked PyTorch-style weights.
# -----------------------------------------------------------------------------
def _reference_forward(x, h_0, c_0, params, compute_dtype=jnp.bfloat16):
    H = h_0.shape[-1]
    f32 = jnp.float32

    def mm(a, w_t):
        return jnp.dot(a.astype(compute_dtype), w_t.astype(compute_dtype),
                       preferred_element_type=f32)

    inp = x.astype(f32)
    h_list, c_list = [], []
    for i, p in enumerate(params):
        gates = (mm(inp, p["w_ih"].T) + mm(h_0[i].astype(f32), p["w_hh"].T)
                 + p["b_ih"].astype(f32) + p["b_hh"].astype(f32))
        ig = jax.nn.sigmoid(gates[:, 0 * H:1 * H])
        fg = jax.nn.sigmoid(gates[:, 1 * H:2 * H])
        gg = jnp.tanh(gates[:, 2 * H:3 * H])
        og = jax.nn.sigmoid(gates[:, 3 * H:4 * H])
        c_i = fg * c_0[i].astype(f32) + ig * gg
        h_i = og * jnp.tanh(c_i)
        inp = h_i
        h_list.append(h_i)
        c_list.append(c_i)
    return inp, (jnp.stack(h_list), jnp.stack(c_list))


if __name__ == "__main__":
    B = 6           # batch (exercises sublane padding)
    IN = 40         # input_size (exercises lane padding)
    H = 32          # hidden_size
    L = 3           # layers

    key = jax.random.PRNGKey(0)
    kx, kh, kc, kp = jax.random.split(key, 4)

    x = jax.random.normal(kx, (B, IN), jnp.float32)
    h_0 = jax.random.normal(kh, (L, B, H), jnp.float32)
    c_0 = jax.random.normal(kc, (L, B, H), jnp.float32)

    params = init_stacked_lstm_params(kp, IN, H, L)
    w_all, b_all = pack_stacked_lstm_params(params, IN, H)

    # Auto path (resident weights at these shapes).
    out, (h_1, c_1) = stacked_lstm_forward(x, h_0, c_0, w_all, b_all,
                                           hidden_size=H)
    # Also exercise the per-layer streaming (pipelined) path.
    out_s, (h_s, c_s) = stacked_lstm_forward(x, h_0, c_0, w_all, b_all,
                                             hidden_size=H,
                                             weights_resident=False)
    jax.block_until_ready((out, h_1, c_1, out_s, h_s, c_s))

    ref_out, (ref_h, ref_c) = _reference_forward(x, h_0, c_0, params)
    assert out.shape == (B, H) and h_1.shape == (L, B, H) and c_1.shape == (L, B, H)
    tol = dict(atol=2e-3, rtol=2e-3)
    assert jnp.allclose(out, ref_out, **tol)
    assert jnp.allclose(h_1, ref_h, **tol)
    assert jnp.allclose(c_1, ref_c, **tol)
    assert jnp.allclose(out_s, ref_out, **tol)
    assert jnp.allclose(h_s, ref_h, **tol)
    assert jnp.allclose(c_s, ref_c, **tol)

    print("KERNEL_OK")
</pallas_src>

<mosaic_0001>
module attributes {stable_mosaic.version = 11 : i64} {
  func.func @_stacked_lstm_resident_kernel(%arg0: i32, %arg1: memref<16x128xbf16, #tpu.memory_space<vmem>>, %arg2: memref<3x16x128xf32, #tpu.memory_space<vmem>>, %arg3: memref<3x16x128xf32, #tpu.memory_space<vmem>>, %arg4: memref<3x256x512xbf16, #tpu.memory_space<vmem>>, %arg5: memref<3x1x512xf32, #tpu.memory_space<vmem>>, %arg6: memref<3x16x128xf32, #tpu.memory_space<vmem>>, %arg7: memref<3x16x128xf32, #tpu.memory_space<vmem>>, %arg8: memref<16x256xbf16, #tpu.memory_space<vmem>>) attributes {dimension_semantics = [#tpu.dimension_semantics<arbitrary>], iteration_bounds = array<i64: 1>, scalar_prefetch = 0 : i64, scratch_operands = 1 : i64, tpu.core_type = #tpu.core_type<tc>, window_params = [{pipeline_mode = #tpu.pipeline_mode<synchronous>, transform_indices = @transform_0, window_bounds = array<i64: 16, 128>}, {pipeline_mode = #tpu.pipeline_mode<synchronous>, transform_indices = @transform_1, window_bounds = array<i64: 3, 16, 128>}, {pipeline_mode = #tpu.pipeline_mode<synchronous>, transform_indices = @transform_2, window_bounds = array<i64: 3, 16, 128>}, {pipeline_mode = #tpu.pipeline_mode<synchronous>, transform_indices = @transform_3, window_bounds = array<i64: 3, 256, 512>}, {pipeline_mode = #tpu.pipeline_mode<synchronous>, transform_indices = @transform_4, window_bounds = array<i64: 3, 1, 512>}, {pipeline_mode = #tpu.pipeline_mode<synchronous>, transform_indices = @transform_5, window_bounds = array<i64: 3, 16, 128>}, {pipeline_mode = #tpu.pipeline_mode<synchronous>, transform_indices = @transform_6, window_bounds = array<i64: 3, 16, 128>}]} {
    %c0 = arith.constant 0 : index
    %c0_0 = arith.constant 0 : index
    %0 = vector.load %arg1[%c0, %c0_0] : memref<16x128xbf16, #tpu.memory_space<vmem>>, vector<16x128xbf16>
    %c0_1 = arith.constant 0 : index
    %c0_2 = arith.constant 0 : index
    %1 = vector.load %arg8[%c0_1, %c0_2] : memref<16x256xbf16, #tpu.memory_space<vmem>>, vector<16x128xbf16>
    tpu.vector_store %arg8[%c0_1, %c0_2], %0 {strides = array<i32>} : memref<16x256xbf16, #tpu.memory_space<vmem>>, vector<16x128xbf16>,
    %c0_3 = arith.constant 0 : index
    %c0_4 = arith.constant 0 : index
    %c0_5 = arith.constant 0 : index
    %2 = vector.load %arg2[%c0_3, %c0_4, %c0_5] : memref<3x16x128xf32, #tpu.memory_space<vmem>>, vector<1x16x128xf32>
    %3 = vector.shape_cast %2 : vector<1x16x128xf32> to vector<16x128xf32>
    %4 = arith.truncf %3 : vector<16x128xf32> to vector<16x128xbf16>
    %c0_6 = arith.constant 0 : index
    %c128 = arith.constant 128 : index
    %5 = vector.load %arg8[%c0_6, %c128] : memref<16x256xbf16, #tpu.memory_space<vmem>>, vector<16x128xbf16>
    tpu.vector_store %arg8[%c0_6, %c128], %4 {strides = array<i32>} : memref<16x256xbf16, #tpu.memory_space<vmem>>, vector<16x128xbf16>,
    %c0_7 = arith.constant 0 : index
    %c0_8 = arith.constant 0 : index
    %6 = vector.load %arg8[%c0_7, %c0_8] : memref<16x256xbf16, #tpu.memory_space<vmem>>, vector<16x256xbf16>
    %c0_9 = arith.constant 0 : index
    %c0_10 = arith.constant 0 : index
    %c0_11 = arith.constant 0 : index
    %7 = vector.load %arg4[%c0_9, %c0_10, %c0_11] : memref<3x256x512xbf16, #tpu.memory_space<vmem>>, vector<1x256x512xbf16>
    %8 = vector.shape_cast %7 : vector<1x256x512xbf16> to vector<256x512xbf16>
    %cst = arith.constant dense<0.000000e+00> : vector<16x512xf32>
    %9 = tpu.matmul %6, %8, %cst {dimension_numbers = #tpu.dot_dimension_numbers<[1], [0], [0], [1], [0, 0, 1, 1], [], []>} : vector<16x256xbf16>, vector<256x512xbf16>, vector<16x512xf32> -> vector<16x512xf32>
    %c0_12 = arith.constant 0 : index
    %c0_13 = arith.constant 0 : index
    %c0_14 = arith.constant 0 : index
    %10 = vector.load %arg5[%c0_12, %c0_13, %c0_14] : memref<3x1x512xf32, #tpu.memory_space<vmem>>, vector<1x1x512xf32>
    %11 = vector.shape_cast %10 : vector<1x1x512xf32> to vector<1x512xf32>
    %12 = vector.broadcast %11 : vector<1x512xf32> to vector<16x512xf32>
    %13 = arith.addf %9, %12 : vector<16x512xf32>
    %c0_15 = arith.constant 0 : index
    %c0_16 = arith.constant 0 : index
    %c0_17 = arith.constant 0 : index
    %14 = vector.load %arg3[%c0_15, %c0_16, %c0_17] : memref<3x16x128xf32, #tpu.memory_space<vmem>>, vector<1x16x128xf32>
    %15 = vector.shape_cast %14 : vector<1x16x128xf32> to vector<16x128xf32>
    %16 = vector.extract_strided_slice %13 {offsets = [0, 0], sizes = [16, 128], strides = [1, 1]} : vector<16x512xf32> to vector<16x128xf32>
    %17 = arith.negf %16 : vector<16x128xf32>
    %18 = math.exp %17 : vector<16x128xf32>
    %cst_18 = arith.constant 1.000000e+00 : f32
    %19 = vector.broadcast %cst_18 : f32 to vector<16x128xf32>
    %20 = arith.addf %19, %18 : vector<16x128xf32>
    %21 = arith.divf %19, %20 : vector<16x128xf32>
    %22 = vector.extract_strided_slice %13 {offsets = [0, 128], sizes = [16, 128], strides = [1, 1]} : vector<16x512xf32> to vector<16x128xf32>
    %23 = arith.negf %22 : vector<16x128xf32>
    %24 = math.exp %23 : vector<16x128xf32>
    %cst_19 = arith.constant 1.000000e+00 : f32
    %25 = vector.broadcast %cst_19 : f32 to vector<16x128xf32>
    %26 = arith.addf %25, %24 : vector<16x128xf32>
    %27 = arith.divf %25, %26 : vector<16x128xf32>
    %28 = vector.extract_strided_slice %13 {offsets = [0, 256], sizes = [16, 128], strides = [1, 1]} : vector<16x512xf32> to vector<16x128xf32>
    %29 = math.tanh %28 : vector<16x128xf32>
    %30 = vector.extract_strided_slice %13 {offsets = [0, 384], sizes = [16, 128], strides = [1, 1]} : vector<16x512xf32> to vector<16x128xf32>
    %31 = arith.negf %30 : vector<16x128xf32>
    %32 = math.exp %31 : vector<16x128xf32>
    %cst_20 = arith.constant 1.000000e+00 : f32
    %33 = vector.broadcast %cst_20 : f32 to vector<16x128xf32>
    %34 = arith.addf %33, %32 : vector<16x128xf32>
    %35 = arith.divf %33, %34 : vector<16x128xf32>
    %36 = arith.mulf %27, %15 : vector<16x128xf32>
    %37 = arith.mulf %21, %29 : vector<16x128xf32>
    %38 = arith.addf %36, %37 : vector<16x128xf32>
    %39 = math.tanh %38 : vector<16x128xf32>
    %40 = arith.mulf %35, %39 : vector<16x128xf32>
    %c0_21 = arith.constant 0 : index
    %c0_22 = arith.constant 0 : index
    %c0_23 = arith.constant 0 : index
    %41 = vector.load %arg6[%c0_21, %c0_22, %c0_23] : memref<3x16x128xf32, #tpu.memory_space<vmem>>, vector<1x16x128xf32>
    %42 = vector.shape_cast %41 : vector<1x16x128xf32> to vector<16x128xf32>
    %43 = vector.shape_cast %40 : vector<16x128xf32> to vector<1x16x128xf32>
    tpu.vector_store %arg6[%c0_21, %c0_22, %c0_23], %43 {strides = array<i32>} : memref<3x16x128xf32, #tpu.memory_space<vmem>>, vector<1x16x128xf32>,
    %c0_24 = arith.constant 0 : index
    %c0_25 = arith.constant 0 : index
    %c0_26 = arith.constant 0 : index
    %44 = vector.load %arg7[%c0_24, %c0_25, %c0_26] : memref<3x16x128xf32, #tpu.memory_space<vmem>>, vector<1x16x128xf32>
    %45 = vector.shape_cast %44 : vector<1x16x128xf32> to vector<16x128xf32>
    %46 = vector.shape_cast %38 : vector<16x128xf32> to vector<1x16x128xf32>
    tpu.vector_store %arg7[%c0_24, %c0_25, %c0_26], %46 {strides = array<i32>} : memref<3x16x128xf32, #tpu.memory_space<vmem>>, vector<1x16x128xf32>,
    %47 = arith.truncf %40 : vector<16x128xf32> to vector<16x128xbf16>
    %c0_27 = arith.constant 0 : index
    %c0_28 = arith.constant 0 : index
    %48 = vector.load %arg8[%c0_27, %c0_28] : memref<16x256xbf16, #tpu.memory_space<vmem>>, vector<16x128xbf16>
    tpu.vector_store %arg8[%c0_27, %c0_28], %47 {strides = array<i32>} : memref<16x256xbf16, #tpu.memory_space<vmem>>, vector<16x128xbf16>,
    %c1 = arith.constant 1 : index
    %c0_29 = arith.constant 0 : index
    %c0_30 = arith.constant 0 : index
    %49 = vector.load %arg2[%c1, %c0_29, %c0_30] : memref<3x16x128xf32, #tpu.memory_space<vmem>>, vector<1x16x128xf32>
    %50 = vector.shape_cast %49 : vector<1x16x128xf32> to vector<16x128xf32>
    %51 = arith.truncf %50 : vector<16x128xf32> to vector<16x128xbf16>
    %c0_31 = arith.constant 0 : index
    %c128_32 = arith.constant 128 : index
    %52 = vector.load %arg8[%c0_31, %c128_32] : memref<16x256xbf16, #tpu.memory_space<vmem>>, vector<16x128xbf16>
    tpu.vector_store %arg8[%c0_31, %c128_32], %51 {strides = array<i32>} : memref<16x256xbf16, #tpu.memory_space<vmem>>, vector<16x128xbf16>,
    %c0_33 = arith.constant 0 : index
    %c0_34 = arith.constant 0 : index
    %53 = vector.load %arg8[%c0_33, %c0_34] : memref<16x256xbf16, #tpu.memory_space<vmem>>, vector<16x256xbf16>
    %c1_35 = arith.constant 1 : index
    %c0_36 = arith.constant 0 : index
    %c0_37 = arith.constant 0 : index
    %54 = vector.load %arg4[%c1_35, %c0_36, %c0_37] : memref<3x256x512xbf16, #tpu.memory_space<vmem>>, vector<1x256x512xbf16>
    %55 = vector.shape_cast %54 : vector<1x256x512xbf16> to vector<256x512xbf16>
    %cst_38 = arith.constant dense<0.000000e+00> : vector<16x512xf32>
    %56 = tpu.matmul %53, %55, %cst_38 {dimension_numbers = #tpu.dot_dimension_numbers<[1], [0], [0], [1], [0, 0, 1, 1], [], []>} : vector<16x256xbf16>, vector<256x512xbf16>, vector<16x512xf32> -> vector<16x512xf32>
    %c1_39 = arith.constant 1 : index
    %c0_40 = arith.constant 0 : index
    %c0_41 = arith.constant 0 : index
    %57 = vector.load %arg5[%c1_39, %c0_40, %c0_41] : memref<3x1x512xf32, #tpu.memory_space<vmem>>, vector<1x1x512xf32>
    %58 = vector.shape_cast %57 : vector<1x1x512xf32> to vector<1x512xf32>
    %59 = vector.broadcast %58 : vector<1x512xf32> to vector<16x512xf32>
    %60 = arith.addf %56, %59 : vector<16x512xf32>
    %c1_42 = arith.constant 1 : index
    %c0_43 = arith.constant 0 : index
    %c0_44 = arith.constant 0 : index
    %61 = vector.load %arg3[%c1_42, %c0_43, %c0_44] : memref<3x16x128xf32, #tpu.memory_space<vmem>>, vector<1x16x128xf32>
    %62 = vector.shape_cast %61 : vector<1x16x128xf32> to vector<16x128xf32>
    %63 = vector.extract_strided_slice %60 {offsets = [0, 0], sizes = [16, 128], strides = [1, 1]} : vector<16x512xf32> to vector<16x128xf32>
    %64 = arith.negf %63 : vector<16x128xf32>
    %65 = math.exp %64 : vector<16x128xf32>
    %cst_45 = arith.constant 1.000000e+00 : f32
    %66 = vector.broadcast %cst_45 : f32 to vector<16x128xf32>
    %67 = arith.addf %66, %65 : vector<16x128xf32>
    %68 = arith.divf %66, %67 : vector<16x128xf32>
    %69 = vector.extract_strided_slice %60 {offsets = [0, 128], sizes = [16, 128], strides = [1, 1]} : vector<16x512xf32> to vector<16x128xf32>
    %70 = arith.negf %69 : vector<16x128xf32>
    %71 = math.exp %70 : vector<16x128xf32>
    %cst_46 = arith.constant 1.000000e+00 : f32
    %72 = vector.broadcast %cst_46 : f32 to vector<16x128xf32>
    %73 = arith.addf %72, %71 : vector<16x128xf32>
    %74 = arith.divf %72, %73 : vector<16x128xf32>
    %75 = vector.extract_strided_slice %60 {offsets = [0, 256], sizes = [16, 128], strides = [1, 1]} : vector<16x512xf32> to vector<16x128xf32>
    %76 = math.tanh %75 : vector<16x128xf32>
    %77 = vector.extract_strided_slice %60 {offsets = [0, 384], sizes = [16, 128], strides = [1, 1]} : vector<16x512xf32> to vector<16x128xf32>
    %78 = arith.negf %77 : vector<16x128xf32>
    %79 = math.exp %78 : vector<16x128xf32>
    %cst_47 = arith.constant 1.000000e+00 : f32
    %80 = vector.broadcast %cst_47 : f32 to vector<16x128xf32>
    %81 = arith.addf %80, %79 : vector<16x128xf32>
    %82 = arith.divf %80, %81 : vector<16x128xf32>
    %83 = arith.mulf %74, %62 : vector<16x128xf32>
    %84 = arith.mulf %68, %76 : vector<16x128xf32>
    %85 = arith.addf %83, %84 : vector<16x128xf32>
    %86 = math.tanh %85 : vector<16x128xf32>
    %87 = arith.mulf %82, %86 : vector<16x128xf32>
    %c1_48 = arith.constant 1 : index
    %c0_49 = arith.constant 0 : index
    %c0_50 = arith.constant 0 : index
    %88 = vector.load %arg6[%c1_48, %c0_49, %c0_50] : memref<3x16x128xf32, #tpu.memory_space<vmem>>, vector<1x16x128xf32>
    %89 = vector.shape_cast %88 : vector<1x16x128xf32> to vector<16x128xf32>
    %90 = vector.shape_cast %87 : vector<16x128xf32> to vector<1x16x128xf32>
    tpu.vector_store %arg6[%c1_48, %c0_49, %c0_50], %90 {strides = array<i32>} : memref<3x16x128xf32, #tpu.memory_space<vmem>>, vector<1x16x128xf32>,
    %c1_51 = arith.constant 1 : index
    %c0_52 = arith.constant 0 : index
    %c0_53 = arith.constant 0 : index
    %91 = vector.load %arg7[%c1_51, %c0_52, %c0_53] : memref<3x16x128xf32, #tpu.memory_space<vmem>>, vector<1x16x128xf32>
    %92 = vector.shape_cast %91 : vector<1x16x128xf32> to vector<16x128xf32>
    %93 = vector.shape_cast %85 : vector<16x128xf32> to vector<1x16x128xf32>
    tpu.vector_store %arg7[%c1_51, %c0_52, %c0_53], %93 {strides = array<i32>} : memref<3x16x128xf32, #tpu.memory_space<vmem>>, vector<1x16x128xf32>,
    %94 = arith.truncf %87 : vector<16x128xf32> to vector<16x128xbf16>
    %c0_54 = arith.constant 0 : index
    %c0_55 = arith.constant 0 : index
    %95 = vector.load %arg8[%c0_54, %c0_55] : memref<16x256xbf16, #tpu.memory_space<vmem>>, vector<16x128xbf16>
    tpu.vector_store %arg8[%c0_54, %c0_55], %94 {strides = array<i32>} : memref<16x256xbf16, #tpu.memory_space<vmem>>, vector<16x128xbf16>,
    %c2 = arith.constant 2 : index
    %c0_56 = arith.constant 0 : index
    %c0_57 = arith.constant 0 : index
    %96 = vector.load %arg2[%c2, %c0_56, %c0_57] : memref<3x16x128xf32, #tpu.memory_space<vmem>>, vector<1x16x128xf32>
    %97 = vector.shape_cast %96 : vector<1x16x128xf32> to vector<16x128xf32>
    %98 = arith.truncf %97 : vector<16x128xf32> to vector<16x128xbf16>
    %c0_58 = arith.constant 0 : index
    %c128_59 = arith.constant 128 : index
    %99 = vector.load %arg8[%c0_58, %c128_59] : memref<16x256xbf16, #tpu.memory_space<vmem>>, vector<16x128xbf16>
    tpu.vector_store %arg8[%c0_58, %c128_59], %98 {strides = array<i32>} : memref<16x256xbf16, #tpu.memory_space<vmem>>, vector<16x128xbf16>,
    %c0_60 = arith.constant 0 : index
    %c0_61 = arith.constant 0 : index
    %100 = vector.load %arg8[%c0_60, %c0_61] : memref<16x256xbf16, #tpu.memory_space<vmem>>, vector<16x256xbf16>
    %c2_62 = arith.constant 2 : index
    %c0_63 = arith.constant 0 : index
    %c0_64 = arith.constant 0 : index
    %101 = vector.load %arg4[%c2_62, %c0_63, %c0_64] : memref<3x256x512xbf16, #tpu.memory_space<vmem>>, vector<1x256x512xbf16>
    %102 = vector.shape_cast %101 : vector<1x256x512xbf16> to vector<256x512xbf16>
    %cst_65 = arith.constant dense<0.000000e+00> : vector<16x512xf32>
    %103 = tpu.matmul %100, %102, %cst_65 {dimension_numbers = #tpu.dot_dimension_numbers<[1], [0], [0], [1], [0, 0, 1, 1], [], []>} : vector<16x256xbf16>, vector<256x512xbf16>, vector<16x512xf32> -> vector<16x512xf32>
    %c2_66 = arith.constant 2 : index
    %c0_67 = arith.constant 0 : index
    %c0_68 = arith.constant 0 : index
    %104 = vector.load %arg5[%c2_66, %c0_67, %c0_68] : memref<3x1x512xf32, #tpu.memory_space<vmem>>, vector<1x1x512xf32>
    %105 = vector.shape_cast %104 : vector<1x1x512xf32> to vector<1x512xf32>
    %106 = vector.broadcast %105 : vector<1x512xf32> to vector<16x512xf32>
    %107 = arith.addf %103, %106 : vector<16x512xf32>
    %c2_69 = arith.constant 2 : index
    %c0_70 = arith.constant 0 : index
    %c0_71 = arith.constant 0 : index
    %108 = vector.load %arg3[%c2_69, %c0_70, %c0_71] : memref<3x16x128xf32, #tpu.memory_space<vmem>>, vector<1x16x128xf32>
    %109 = vector.shape_cast %108 : vector<1x16x128xf32> to vector<16x128xf32>
    %110 = vector.extract_strided_slice %107 {offsets = [0, 0], sizes = [16, 128], strides = [1, 1]} : vector<16x512xf32> to vector<16x128xf32>
    %111 = arith.negf %110 : vector<16x128xf32>
    %112 = math.exp %111 : vector<16x128xf32>
    %cst_72 = arith.constant 1.000000e+00 : f32
    %113 = vector.broadcast %cst_72 : f32 to vector<16x128xf32>
    %114 = arith.addf %113, %112 : vector<16x128xf32>
    %115 = arith.divf %113, %114 : vector<16x128xf32>
    %116 = vector.extract_strided_slice %107 {offsets = [0, 128], sizes = [16, 128], strides = [1, 1]} : vector<16x512xf32> to vector<16x128xf32>
    %117 = arith.negf %116 : vector<16x128xf32>
    %118 = math.exp %117 : vector<16x128xf32>
    %cst_73 = arith.constant 1.000000e+00 : f32
    %119 = vector.broadcast %cst_73 : f32 to vector<16x128xf32>
    %120 = arith.addf %119, %118 : vector<16x128xf32>
    %121 = arith.divf %119, %120 : vector<16x128xf32>
    %122 = vector.extract_strided_slice %107 {offsets = [0, 256], sizes = [16, 128], strides = [1, 1]} : vector<16x512xf32> to vector<16x128xf32>
    %123 = math.tanh %122 : vector<16x128xf32>
    %124 = vector.extract_strided_slice %107 {offsets = [0, 384], sizes = [16, 128], strides = [1, 1]} : vector<16x512xf32> to vector<16x128xf32>
    %125 = arith.negf %124 : vector<16x128xf32>
    %126 = math.exp %125 : vector<16x128xf32>
    %cst_74 = arith.constant 1.000000e+00 : f32
    %127 = vector.broadcast %cst_74 : f32 to vector<16x128xf32>
    %128 = arith.addf %127, %126 : vector<16x128xf32>
    %129 = arith.divf %127, %128 : vector<16x128xf32>
    %130 = arith.mulf %121, %109 : vector<16x128xf32>
    %131 = arith.mulf %115, %123 : vector<16x128xf32>
    %132 = arith.addf %130, %131 : vector<16x128xf32>
    %133 = math.tanh %132 : vector<16x128xf32>
    %134 = arith.mulf %129, %133 : vector<16x128xf32>
    %c2_75 = arith.constant 2 : index
    %c0_76 = arith.constant 0 : index
    %c0_77 = arith.constant 0 : index
    %135 = vector.load %arg6[%c2_75, %c0_76, %c0_77] : memref<3x16x128xf32, #tpu.memory_space<vmem>>, vector<1x16x128xf32>
    %136 = vector.shape_cast %135 : vector<1x16x128xf32> to vector<16x128xf32>
    %137 = vector.shape_cast %134 : vector<16x128xf32> to vector<1x16x128xf32>
    tpu.vector_store %arg6[%c2_75, %c0_76, %c0_77], %137 {strides = array<i32>} : memref<3x16x128xf32, #tpu.memory_space<vmem>>, vector<1x16x128xf32>,
    %c2_78 = arith.constant 2 : index
    %c0_79 = arith.constant 0 : index
    %c0_80 = arith.constant 0 : index
    %138 = vector.load %arg7[%c2_78, %c0_79, %c0_80] : memref<3x16x128xf32, #tpu.memory_space<vmem>>, vector<1x16x128xf32>
    %139 = vector.shape_cast %138 : vector<1x16x128xf32> to vector<16x128xf32>
    %140 = vector.shape_cast %132 : vector<16x128xf32> to vector<1x16x128xf32>
    tpu.vector_store %arg7[%c2_78, %c0_79, %c0_80], %140 {strides = array<i32>} : memref<3x16x128xf32, #tpu.memory_space<vmem>>, vector<1x16x128xf32>,
    return
  }
  func.func @transform_0(%arg0: i32) -> (i32, i32) {
    %c0_i32 = arith.constant 0 : i32
    %c0_i32_0 = arith.constant 0 : i32
    %c0_i32_1 = arith.constant 0 : i32
    return %c0_i32, %c0_i32_0 : i32, i32
  }
  func.func @transform_1(%arg0: i32) -> (i32, i32, i32) {
    %c0_i32 = arith.constant 0 : i32
    %c0_i32_0 = arith.constant 0 : i32
    %c0_i32_1 = arith.constant 0 : i32
    %c0_i32_2 = arith.constant 0 : i32
    return %c0_i32, %c0_i32_0, %c0_i32_1 : i32, i32, i32
  }
  func.func @transform_2(%arg0: i32) -> (i32, i32, i32) {
    %c0_i32 = arith.constant 0 : i32
    %c0_i32_0 = arith.constant 0 : i32
    %c0_i32_1 = arith.constant 0 : i32
    %c0_i32_2 = arith.constant 0 : i32
    return %c0_i32, %c0_i32_0, %c0_i32_1 : i32, i32, i32
  }
  func.func @transform_3(%arg0: i32) -> (i32, i32, i32) {
    %c0_i32 = arith.constant 0 : i32
    %c0_i32_0 = arith.constant 0 : i32
    %c0_i32_1 = arith.constant 0 : i32
    %c0_i32_2 = arith.constant 0 : i32
    return %c0_i32, %c0_i32_0, %c0_i32_1 : i32, i32, i32
  }
  func.func @transform_4(%arg0: i32) -> (i32, i32, i32) {
    %c0_i32 = arith.constant 0 : i32
    %c0_i32_0 = arith.constant 0 : i32
    %c0_i32_1 = arith.constant 0 : i32
    %c0_i32_2 = arith.constant 0 : i32
    return %c0_i32, %c0_i32_0, %c0_i32_1 : i32, i32, i32
  }
  func.func @transform_5(%arg0: i32) -> (i32, i32, i32) {
    %c0_i32 = arith.constant 0 : i32
    %c0_i32_0 = arith.constant 0 : i32
    %c0_i32_1 = arith.constant 0 : i32
    %c0_i32_2 = arith.constant 0 : i32
    return %c0_i32, %c0_i32_0, %c0_i32_1 : i32, i32, i32
  }
  func.func @transform_6(%arg0: i32) -> (i32, i32, i32) {
    %c0_i32 = arith.constant 0 : i32
    %c0_i32_0 = arith.constant 0 : i32
    %c0_i32_1 = arith.constant 0 : i32
    %c0_i32_2 = arith.constant 0 : i32
    return %c0_i32, %c0_i32_0, %c0_i32_1 : i32, i32, i32
  }
}

</mosaic_0001>

<bundles_post_ra>
// kernel: stacked_lstm_forward.1
= control target key start
LH: loop header
LB: loop body
LE: loop exit
PB: predicated region body
PF: predicated region fallthrough
CT: control target
= control target key end

     0   :  { %12 = vsyncpa [#allocation4], 0  ;;  %s3190_s24 = smov [#allocation3]   ;;  %s3191_s26 = smov 256   ;;  %s3743_s0 = inlined_call_operand.vmem [shape: bf16[16,128], index: 0, kind: input, shape index: {}]   ;;  %s3744_s1 = inlined_call_operand.vmem [shape: f32[3,16,128], index: 1, kind: input, shape index: {}, may-alias: {1,5}]   ;;  %s3745_s2 = inlined_call_operand.vmem [shape: f32[3,16,128], index: 2, kind: input, shape index: {}, may-alias: {2,6}]   ;;  %s3746_s3 = inlined_call_operand.hbm [shape: bf16[3,256,512], index: 3, kind: input, shape index: {}]   ;;  %s3747_s4 = inlined_call_operand.vmem [shape: f32[3,1,512], index: 4, kind: input, shape index: {}]   ;;  %s3748_s5 = inlined_call_operand.vmem [shape: f32[3,16,128], index: 5, kind: output, shape index: {0}, may-alias: {1,5}]   ;;  %s3749_s6 = inlined_call_operand.vmem [shape: f32[3,16,128], index: 6, kind: output, shape index: {1}, may-alias: {2,6}]  }
   0x1   :  { %s23_s23 = sshll.u32 %s3746_s3, 4  ;;  %s25_s25 = sshll.u32 %s3190_s24, 4  ;;  %s24_s23 = int_to_ptr.hbm [resolvable:$true] %s23_s23  ;;  %s26_s25 = int_to_ptr.vmem [resolvable:$true] %s25_s25 }
   0x2   :  { %s3192_s27 = smov 16  }
   0x3   :  { %31 = dma.hbm_to_vmem [thread:$0]  %s24_s23, 24576, %s26_s25, [#allocation4], %s3191_s26, %s3191_s26, %s3192_s27  }
   0x4   :  { %3188 = dma.done.wait [#allocation4], 24576  }
   0x5   :  { %3189 = vsyncadd [#allocation4], 4294942720  ;;  %v2161_v0 = vld [vmem:[#allocation3 + $0xe0] sm:$0xf]  ;;  %v2899_v1 = vld [vmem:[#allocation3 + $0xec] sm:$0xf0] }
   0x6   :  { %v2897_v2 = vld [vmem:[#allocation3 + $0xe4] sm:$0xf]  ;;  %v2162_v3 = vor.u32 %v2899_v1, %v2161_v0  ;;  %v2163_v4 = vld [vmem:[#allocation3 + $0xf0] sm:$0xf0]  ;;  %v2289_v9 = vld [vmem:[#allocation3 + $0x1e0] sm:$0xf] }
   0x7   :  { %v2929_v5 = vld [vmem:[#allocation3 + $0x1e4] sm:$0xf]  ;;  %v2291_v6 = vld [vmem:[#allocation3 + $0x1f0] sm:$0xf0]  ;;  %v2166_v7 = vor.u32 %v2897_v2, %v2163_v4  ;;  %v2931_v10 = vld [vmem:[#allocation3 + $0x1ec] sm:$0xf0] }
   0x8   :  { %v2294_v8 = vor.u32 %v2929_v5, %v2291_v6  ;;  %v2145_v11 = vld [vmem:[#allocation3 + $0xc0] sm:$0xf]  ;;  %454 = vmatpush.bf16.msra.mxu0 %v2162_v3  ;;  %v2290_v12 = vor.u32 %v2931_v10, %v2289_v9  ;;  %v2895_v13 = vld [vmem:[#allocation3 + $0xcc] sm:$0xf0]  ;;  %v2893_v14 = vld [vmem:[#allocation3 + $0xc4] sm:$0xf] }
   0x9   :  { %v2147_v15 = vld [vmem:[#allocation3 + $0xd0] sm:$0xf0]  ;;  %482 = vmatpush.bf16.msra.mxu2 %v2166_v7  ;;  %v2146_v16 = vor.u32 %v2895_v13, %v2145_v11  ;;  %v2925_v18 = vld [vmem:[#allocation3 + $0x1c4] sm:$0xf]  ;;  %v2273_v20 = vld [vmem:[#allocation3 + $0x1c0] sm:$0xf] }
   0xa   :  { %496 = vmatpush.bf16.msra.mxu3 %v2294_v8  ;;  %v2150_v17 = vor.u32 %v2893_v14, %v2147_v15  ;;  %v2275_v19 = vld [vmem:[#allocation3 + $0x1d0] sm:$0xf0]  ;;  %468 = vmatpush.bf16.msra.mxu1 %v2290_v12  ;;  %v2927_v22 = vld [vmem:[#allocation3 + $0x1cc] sm:$0xf0]  ;;  %v2129_v23 = vld [vmem:[#allocation3 + $0xa0] sm:$0xf] }
   0xb   :  { %v2278_v21 = vor.u32 %v2925_v18, %v2275_v19  ;;  %v2891_v24 = vld [vmem:[#allocation3 + $0xac] sm:$0xf0]  ;;  %v2274_v25 = vor.u32 %v2927_v22, %v2273_v20  ;;  %v2889_v26 = vld [vmem:[#allocation3 + $0xa4] sm:$0xf]  ;;  %v2131_v27 = vld [vmem:[#allocation3 + $0xb0] sm:$0xf0] }
   0xc   :  { %v2921_v28 = vld [vmem:[#allocation3 + $0x1a4] sm:$0xf]  ;;  %455 = vmatpush.bf16.msra.mxu0 %v2146_v16  ;;  %v2130_v29 = vor.u32 %v2891_v24, %v2129_v23  ;;  %v2259_v30 = vld [vmem:[#allocation3 + $0x1b0] sm:$0xf0]  ;;  %v2257_v31 = vld [vmem:[#allocation3 + $0x1a0] sm:$0xf]  ;;  %v2134_v33 = vor.u32 %v2889_v26, %v2131_v27 }
   0xd   :  { %v2923_v32 = vld [vmem:[#allocation3 + $0x1ac] sm:$0xf0]  ;;  %483 = vmatpush.bf16.msra.mxu2 %v2150_v17  ;;  %v2262_v34 = vor.u32 %v2921_v28, %v2259_v30  ;;  %v2113_v35 = vld [vmem:[#allocation3 + $0x80] sm:$0xf]  ;;  %v2885_v37 = vld [vmem:[#allocation3 + $0x84] sm:$0xf] }
   0xe   :  { %497 = vmatpush.bf16.msra.mxu3 %v2278_v21  ;;  %v2887_v36 = vld [vmem:[#allocation3 + $0x8c] sm:$0xf0]  ;;  %469 = vmatpush.bf16.msra.mxu1 %v2274_v25  ;;  %v2258_v38 = vor.u32 %v2923_v32, %v2257_v31  ;;  %v2115_v39 = vld [vmem:[#allocation3 + $0x90] sm:$0xf0]  ;;  %v2917_v40 = vld [vmem:[#allocation3 + $0x184] sm:$0xf] }
   0xf   :  { %v2243_v41 = vld [vmem:[#allocation3 + $0x190] sm:$0xf0]  ;;  %v2241_v42 = vld [vmem:[#allocation3 + $0x180] sm:$0xf]  ;;  %v2919_v43 = vld [vmem:[#allocation3 + $0x18c] sm:$0xf0]  ;;  %v2114_v44 = vor.u32 %v2887_v36, %v2113_v35  ;;  %v2118_v45 = vor.u32 %v2885_v37, %v2115_v39 }
  0x10   :  { %456 = vmatpush.bf16.msra.mxu0 %v2130_v29  ;;  %v2246_v46 = vor.u32 %v2917_v40, %v2243_v41  ;;  %v2097_v47 = vld [vmem:[#allocation3 + $0x60] sm:$0xf]  ;;  %v2883_v48 = vld [vmem:[#allocation3 + $0x6c] sm:$0xf0]  ;;  %v2881_v49 = vld [vmem:[#allocation3 + $0x64] sm:$0xf]  ;;  %v2242_v50 = vor.u32 %v2919_v43, %v2241_v42 }
  0x11   :  { %484 = vmatpush.bf16.msra.mxu2 %v2134_v33  ;;  %v2099_v51 = vld [vmem:[#allocation3 + $0x70] sm:$0xf0]  ;;  %v2913_v52 = vld [vmem:[#allocation3 + $0x164] sm:$0xf]  ;;  %v2225_v54 = vld [vmem:[#allocation3 + $0x160] sm:$0xf]  ;;  %v2098_v56 = vor.u32 %v2883_v48, %v2097_v47 }
  0x12   :  { %498 = vmatpush.bf16.msra.mxu3 %v2262_v34  ;;  %470 = vmatpush.bf16.msra.mxu1 %v2258_v38  ;;  %v2227_v53 = vld [vmem:[#allocation3 + $0x170] sm:$0xf0]  ;;  %v2915_v55 = vld [vmem:[#allocation3 + $0x16c] sm:$0xf0]  ;;  %v2102_v57 = vor.u32 %v2881_v49, %v2099_v51  ;;  %v2081_v59 = vld [vmem:[#allocation3 + $0x40] sm:$0xf] }
  0x13   :  { %v2230_v58 = vor.u32 %v2913_v52, %v2227_v53  ;;  %v2879_v60 = vld [vmem:[#allocation3 + $0x4c] sm:$0xf0]  ;;  %v2877_v61 = vld [vmem:[#allocation3 + $0x44] sm:$0xf]  ;;  %v2226_v62 = vor.u32 %v2915_v55, %v2225_v54  ;;  %v2083_v63 = vld [vmem:[#allocation3 + $0x50] sm:$0xf0] }
  0x14   :  { %457 = vmatpush.bf16.msra.mxu0 %v2114_v44  ;;  %v2909_v0 = vld [vmem:[#allocation3 + $0x144] sm:$0xf]  ;;  %v2211_v1 = vld [vmem:[#allocation3 + $0x150] sm:$0xf0]  ;;  %v2209_v2 = vld [vmem:[#allocation3 + $0x140] sm:$0xf]  ;;  %v2082_v4 = vor.u32 %v2879_v60, %v2081_v59  ;;  %v2086_v6 = vor.u32 %v2877_v61, %v2083_v63 }
  0x15   :  { %485 = vmatpush.bf16.msra.mxu2 %v2118_v45  ;;  %v2911_v3 = vld [vmem:[#allocation3 + $0x14c] sm:$0xf0]  ;;  %v2065_v5 = vld [vmem:[#allocation3 + $0x20] sm:$0xf]  ;;  %v2214_v7 = vor.u32 %v2909_v0, %v2211_v1  ;;  %v2873_v9 = vld [vmem:[#allocation3 + $0x24] sm:$0xf] }
  0x16   :  { %499 = vmatpush.bf16.msra.mxu3 %v2246_v46  ;;  %471 = vmatpush.bf16.msra.mxu1 %v2242_v50  ;;  %v2875_v8 = vld [vmem:[#allocation3 + $0x2c] sm:$0xf0]  ;;  %v2067_v10 = vld [vmem:[#allocation3 + $0x30] sm:$0xf0]  ;;  %v2210_v11 = vor.u32 %v2911_v3, %v2209_v2  ;;  %v2905_v12 = vld [vmem:[#allocation3 + $0x124] sm:$0xf] }
  0x17   :  { %v2195_v13 = vld [vmem:[#allocation3 + $0x130] sm:$0xf0]  ;;  %v2193_v14 = vld [vmem:[#allocation3 + $0x120] sm:$0xf]  ;;  %v2907_v15 = vld [vmem:[#allocation3 + $0x12c] sm:$0xf0]  ;;  %v2066_v18 = vor.u32 %v2875_v8, %v2065_v5  ;;  %v2070_v24 = vor.u32 %v2873_v9, %v2067_v10 }
  0x18   :  { %458 = vmatpush.bf16.msra.mxu0 %v2098_v56  ;;  %v2049_v16 = vld [vmem:[#allocation3] sm:$0xf]  ;;  %v2871_v17 = vld [vmem:[#allocation3 + $0xc] sm:$0xf0]  ;;  %v2869_v19 = vld [vmem:[#allocation3 + $0x4] sm:$0xf]  ;;  %v2198_v25 = vor.u32 %v2905_v12, %v2195_v13  ;;  %v2194_v28 = vor.u32 %v2907_v15, %v2193_v14 }
  0x19   :  { %486 = vmatpush.bf16.msra.mxu2 %v2102_v57  ;;  %v2051_v20 = vld [vmem:[#allocation3 + $0x10] sm:$0xf0]  ;;  %v2901_v21 = vld [vmem:[#allocation3 + $0x104] sm:$0xf]  ;;  %v38_v22 = vld [vmem:[%s3743_s0] sm:$0xf]  ;;  %v2050_v37 = vor.u32 %v2871_v17, %v2049_v16 }
  0x1a   :  { %500 = vmatpush.bf16.msra.mxu3 %v2230_v58  ;;  %472 = vmatpush.bf16.msra.mxu1 %v2226_v62  ;;  %v39_v23 = vld [vmem:[%s3743_s0 + $0x4] sm:$0xf]  ;;  %v2169_v27 = vld [vmem:[#allocation3 + $0xe8] sm:$0xf]  ;;  %40 = vst [vmem:[#allocation2] sm:$0xf] %v38_v22  ;;  %v2054_v41 = vor.u32 %v2869_v19, %v2051_v20 }
  0x1b   :  { %v2179_v26 = vld [vmem:[#allocation3 + $0x110] sm:$0xf0]  ;;  %v2900_v29 = vld [vmem:[#allocation3 + $0xf4] sm:$0xf0]  ;;  %41 = vst [vmem:[#allocation2 + $0x8] sm:$0xf] %v39_v23 }
  0x1c   :  { %459 = vmatpush.bf16.msra.mxu0 %v2082_v4  ;;  %v42_v30 = vld [vmem:[%s3744_s1] sm:$0xff]  ;;  %v43_v31 = vld [vmem:[%s3744_s1 + $0x8] sm:$0xff]  ;;  %v2898_v32 = vld [vmem:[#allocation3 + $0xec] sm:$0xf]  ;;  %v2182_v42 = vor.u32 %v2901_v21, %v2179_v26  ;;  %v2170_v45 = vor.u32 %v2900_v29, %v2169_v27 }
  0x1d   :  { %487 = vmatpush.bf16.msra.mxu2 %v2086_v6  ;;  %v2171_v33 = vld [vmem:[#allocation3 + $0xf8] sm:$0xf0]  ;;  %v2930_v34 = vld [vmem:[#allocation3 + $0x1ec] sm:$0xf]  ;;  %v44_v35 = vpack.c.bf16 %v42_v30, %v42_v30  ;;  %v45_v36 = vpack.c.bf16 %v43_v31, %v43_v31  ;;  %v2177_v39 = vld [vmem:[#allocation3 + $0x100] sm:$0xf] }
  0x1e   :  { %501 = vmatpush.bf16.msra.mxu3 %v2214_v7  ;;  %473 = vmatpush.bf16.msra.mxu1 %v2210_v11  ;;  %v2299_v38 = vld [vmem:[#allocation3 + $0x1f8] sm:$0xf0]  ;;  %v2903_v40 = vld [vmem:[#allocation3 + $0x10c] sm:$0xf0]  ;;  %v2297_v43 = vld [vmem:[#allocation3 + $0x1e8] sm:$0xf]  ;;  %v2174_v46 = vor.u32 %v2898_v32, %v2171_v33 }
  0x1f   :  { %v2932_v44 = vld [vmem:[#allocation3 + $0x1f4] sm:$0xf0]  ;;  %46 = vst [vmem:[#allocation2 + $0x4] sm:$0xf] %v44_v35  ;;  %v2309_v47 = vld [vmem:[%s3744_s1 + $0x10] sm:$0xff]  ;;  %v2310_v48 = vld [vmem:[%s3744_s1 + $0x18] sm:$0xff]  ;;  %v2302_v50 = vor.u32 %v2930_v34, %v2299_v38  ;;  %v2178_v51 = vor.u32 %v2903_v40, %v2177_v39 }
  0x20   :  { %460 = vmatpush.bf16.msra.mxu0 %v2066_v18  ;;  %47 = vst [vmem:[#allocation2 + $0xc] sm:$0xf] %v45_v36  ;;  %v2153_v49 = vld [vmem:[#allocation3 + $0xc8] sm:$0xf]  ;;  %v2896_v52 = vld [vmem:[#allocation3 + $0xd4] sm:$0xf0]  ;;  %v2298_v56 = vor.u32 %v2932_v44, %v2297_v43  ;;  %v705_v60 = vpack.c.bf16 %v2309_v47, %v2309_v47  ;;  %v706_v61 = vpack.c.bf16 %v2310_v48, %v2310_v48 }
  0x21   :  { %488 = vmatpush.bf16.msra.mxu2 %v2070_v24  ;;  %v2894_v53 = vld [vmem:[#allocation3 + $0xcc] sm:$0xf]  ;;  %v2155_v54 = vld [vmem:[#allocation3 + $0xd8] sm:$0xf0]  ;;  %v2041_v55 = vld [vmem:[#allocation2] sm:$0xf]  ;;  %v2154_v1 = vor.u32 %v2896_v52, %v2153_v49 }
  0x22   :  { %502 = vmatpush.bf16.msra.mxu3 %v2198_v25  ;;  %474 = vmatpush.bf16.msra.mxu1 %v2194_v28  ;;  %v2926_v57 = vld [vmem:[#allocation3 + $0x1cc] sm:$0xf]  ;;  %v2283_v58 = vld [vmem:[#allocation3 + $0x1d8] sm:$0xf0]  ;;  %v2868_v59 = vld [vmem:[#allocation2 + $0x4] sm:$0xf0]  ;;  %v2158_v2 = vor.u32 %v2894_v53, %v2155_v54 }
  0x23   :  { %v2281_v62 = vld [vmem:[#allocation3 + $0x1c8] sm:$0xf]  ;;  %v2928_v63 = vld [vmem:[#allocation3 + $0x1d4] sm:$0xf0]  ;;  %v3249_v0 = vor.u32 %v2868_v59, %v2041_v55  ;;  %v2286_v5 = vor.u32 %v2926_v57, %v2283_v58  ;;  %v2890_v6 = vld [vmem:[#allocation3 + $0xac] sm:$0xf] }
  0x24   :  { %461 = vmatpush.bf16.msra.mxu0 %v2050_v37  ;;  %v2137_v3 = vld [vmem:[#allocation3 + $0xa8] sm:$0xf]  ;;  %v2892_v4 = vld [vmem:[#allocation3 + $0xb4] sm:$0xf0]  ;;  %v2139_v7 = vld [vmem:[#allocation3 + $0xb8] sm:$0xf0]  ;;  %v2282_v10 = vor.u32 %v2928_v63, %v2281_v62 }
  0x25   :  { %489 = vmatpush.bf16.msra.mxu2 %v2054_v41  ;;  %v2922_v8 = vld [vmem:[#allocation3 + $0x1ac] sm:$0xf]  ;;  %v2267_v11 = vld [vmem:[#allocation3 + $0x1b8] sm:$0xf0]  ;;  %v2265_v12 = vld [vmem:[#allocation3 + $0x1a8] sm:$0xf]  ;;  %v2138_v16 = vor.u32 %v2892_v4, %v2137_v3  ;;  %v2142_v17 = vor.u32 %v2890_v6, %v2139_v7 }
  0x26   :  { %503 = vmatpush.bf16.msra.mxu3 %v2182_v42  ;;  %475 = vmatpush.bf16.msra.mxu1 %v2178_v51  ;;  %v2867_v9 = vld [vmem:[#allocation2 + $0x4] sm:$0xf]  ;;  %v2924_v14 = vld [vmem:[#allocation3 + $0x1b4] sm:$0xf0]  ;;  %v2121_v18 = vld [vmem:[#allocation3 + $0x88] sm:$0xf]  ;;  %v2270_v19 = vor.u32 %v2922_v8, %v2267_v11 }
  0x27   :  { %v2043_v13 = vld [vmem:[#allocation2 + $0x8] sm:$0xf0]  ;;  %707 = vst [vmem:[#allocation2 + $0x4] sm:$0xf] %v705_v60  ;;  %462 = vmatmul.bf16.vlgmr.msra.gmra.mxu0 %v3249_v0  ;;  %v2888_v20 = vld [vmem:[#allocation3 + $0x94] sm:$0xf0]  ;;  %v2266_v23 = vor.u32 %v2924_v14, %v2265_v12 }
  0x28   :  { %510 = vmatpush.bf16.msrb.mxu0 %v2170_v45  ;;  %490 = vmatmul.bf16.vlgmr.msra.gmra.mxu2 %v3249_v0  ;;  %v3253_v15 = vor.u32 %v2867_v9, %v2043_v13  ;;  %708 = vst [vmem:[#allocation2 + $0xc] sm:$0xf] %v706_v61  ;;  %v2886_v21 = vld [vmem:[#allocation3 + $0x8c] sm:$0xf]  ;;  %v2123_v22 = vld [vmem:[#allocation3 + $0x98] sm:$0xf0]  ;;  %v2122_v28 = vor.u32 %v2888_v20, %v2121_v18 }
  0x29   :  { %538 = vmatpush.bf16.msrb.mxu2 %v2174_v46  ;;  %v2918_v24 = vld [vmem:[#allocation3 + $0x18c] sm:$0xf]  ;;  %v2251_v25 = vld [vmem:[#allocation3 + $0x198] sm:$0xf0]  ;;  %v2249_v26 = vld [vmem:[#allocation3 + $0x188] sm:$0xf]  ;;  %v2126_v29 = vor.u32 %v2886_v21, %v2123_v22 }
  0x2a   :  { %552 = vmatpush.bf16.msrb.mxu3 %v2302_v50  ;;  %524 = vmatpush.bf16.msrb.mxu1 %v2298_v56  ;;  %v2920_v27 = vld [vmem:[#allocation3 + $0x194] sm:$0xf0]  ;;  %v2105_v30 = vld [vmem:[#allocation3 + $0x68] sm:$0xf]  ;;  %v2254_v31 = vor.u32 %v2918_v24, %v2251_v25  ;;  %v2882_v33 = vld [vmem:[#allocation3 + $0x6c] sm:$0xf] }
  0x2b   :  { %504 = vmatmul.bf16.vlgmr.msra.gmra.mxu3 %v3253_v15  ;;  %476 = vmatmul.bf16.vlgmr.msra.gmra.mxu1 %v3253_v15  ;;  %v2884_v32 = vld [vmem:[#allocation3 + $0x74] sm:$0xf0]  ;;  %v2107_v34 = vld [vmem:[#allocation3 + $0x78] sm:$0xf0]  ;;  %v2250_v35 = vor.u32 %v2920_v27, %v2249_v26  ;;  %v2914_v36 = vld [vmem:[#allocation3 + $0x16c] sm:$0xf] }
  0x2c   :  { %511 = vmatpush.bf16.msrb.mxu0 %v2154_v1  ;;  %v2235_v37 = vld [vmem:[#allocation3 + $0x178] sm:$0xf0]  ;;  %v2233_v38 = vld [vmem:[#allocation3 + $0x168] sm:$0xf]  ;;  %v2916_v39 = vld [vmem:[#allocation3 + $0x174] sm:$0xf0]  ;;  %v2106_v40 = vor.u32 %v2884_v32, %v2105_v30  ;;  %v2110_v41 = vor.u32 %v2882_v33, %v2107_v34 }
  0x2d   :  { %539 = vmatpush.bf16.msrb.mxu2 %v2158_v2  ;;  %v2089_v42 = vld [vmem:[#allocation3 + $0x48] sm:$0xf]  ;;  %v2238_v43 = vor.u32 %v2914_v36, %v2235_v37  ;;  %v2880_v44 = vld [vmem:[#allocation3 + $0x54] sm:$0xf0]  ;;  %v2878_v45 = vld [vmem:[#allocation3 + $0x4c] sm:$0xf]  ;;  %v2234_v47 = vor.u32 %v2916_v39, %v2233_v38 }
  0x2e   :  { %553 = vmatpush.bf16.msrb.mxu3 %v2286_v5  ;;  %525 = vmatpush.bf16.msrb.mxu1 %v2282_v10  ;;  %v2091_v46 = vld [vmem:[#allocation3 + $0x58] sm:$0xf0]  ;;  %v2910_v48 = vld [vmem:[#allocation3 + $0x14c] sm:$0xf]  ;;  %v2217_v50 = vld [vmem:[#allocation3 + $0x148] sm:$0xf]  ;;  %v2090_v52 = vor.u32 %v2880_v44, %v2089_v42 }
  0x2f   :  { %v2219_v49 = vld [vmem:[#allocation3 + $0x158] sm:$0xf0]  ;;  %v2912_v51 = vld [vmem:[#allocation3 + $0x154] sm:$0xf0]  ;;  %v2094_v53 = vor.u32 %v2878_v45, %v2091_v46  ;;  %v2073_v54 = vld [vmem:[#allocation3 + $0x28] sm:$0xf] }
  0x30   :  { %512 = vmatpush.bf16.msrb.mxu0 %v2138_v16  ;;  %v2222_v55 = vor.u32 %v2910_v48, %v2219_v49  ;;  %v2876_v56 = vld [vmem:[#allocation3 + $0x34] sm:$0xf0]  ;;  %v2874_v57 = vld [vmem:[#allocation3 + $0x2c] sm:$0xf]  ;;  %v2075_v58 = vld [vmem:[#allocation3 + $0x38] sm:$0xf0]  ;;  %v2218_v59 = vor.u32 %v2912_v51, %v2217_v50 }
  0x31   :  { %540 = vmatpush.bf16.msrb.mxu2 %v2142_v17  ;;  %v2906_v60 = vld [vmem:[#allocation3 + $0x12c] sm:$0xf]  ;;  %v2203_v61 = vld [vmem:[#allocation3 + $0x138] sm:$0xf0]  ;;  %v2201_v62 = vld [vmem:[#allocation3 + $0x128] sm:$0xf]  ;;  %v2074_v1 = vor.u32 %v2876_v56, %v2073_v54  ;;  %v2078_v2 = vor.u32 %v2874_v57, %v2075_v58 }
  0x32   :  { %554 = vmatpush.bf16.msrb.mxu3 %v2270_v19  ;;  %526 = vmatpush.bf16.msrb.mxu1 %v2266_v23  ;;  %v2908_v63 = vld [vmem:[#allocation3 + $0x134] sm:$0xf0]  ;;  %v2057_v3 = vld [vmem:[#allocation3 + $0x8] sm:$0xf]  ;;  %v2206_v4 = vor.u32 %v2906_v60, %v2203_v61  ;;  %v2870_v6 = vld [vmem:[#allocation3 + $0xc] sm:$0xf] }
  0x33   :  { %v2872_v5 = vld [vmem:[#allocation3 + $0x14] sm:$0xf0]  ;;  %v2059_v7 = vld [vmem:[#allocation3 + $0x18] sm:$0xf0]  ;;  %v2202_v8 = vor.u32 %v2908_v63, %v2201_v62  ;;  %v2902_v9 = vld [vmem:[#allocation3 + $0x10c] sm:$0xf] }
  0x34   :  { %513 = vmatpush.bf16.msrb.mxu0 %v2122_v28  ;;  %v2187_v10 = vld [vmem:[#allocation3 + $0x118] sm:$0xf0]  ;;  %v2185_v11 = vld [vmem:[#allocation3 + $0x108] sm:$0xf]  ;;  %v2904_v12 = vld [vmem:[#allocation3 + $0x114] sm:$0xf0]  ;;  %v2058_v13 = vor.u32 %v2872_v5, %v2057_v3  ;;  %v2062_v14 = vor.u32 %v2870_v6, %v2059_v7 }
  0x35   :  { %541 = vmatpush.bf16.msrb.mxu2 %v2126_v29  ;;  %v2190_v16 = vor.u32 %v2902_v9, %v2187_v10  ;;  %v2186_v17 = vor.u32 %v2904_v12, %v2185_v11  ;;  %v3264_v18 = vld [vmem:[%s3747_s4] sm:$0xf]  ;;  %v2564_v27 = vld [vmem:[#allocation3 + $0x3f0] sm:$0xf0]  ;;  %v2991_v33 = vld [vmem:[#allocation3 + $0x3c4] sm:$0xf] }
  0x36   :  { %555 = vmatpush.bf16.msrb.mxu3 %v2254_v31  ;;  %527 = vmatpush.bf16.msrb.mxu1 %v2250_v35  ;;  %v116_v19 = vperm.slane %v3264_v18, 0  ;;  %v117_v22 = vperm.slane %v3264_v18, 1  ;;  %v2548_v34 = vld [vmem:[#allocation3 + $0x3d0] sm:$0xf0]  ;;  %v2434_v38 = vld [vmem:[#allocation3 + $0x2e0] sm:$0xf] }
  0x37   :  { %v2551_v35 = vor.u32 %v2991_v33, %v2548_v34  ;;  %v2965_v39 = vld [vmem:[#allocation3 + $0x2ec] sm:$0xf0]  ;;  %v2436_v44 = vld [vmem:[#allocation3 + $0x2f0] sm:$0xf0]  ;;  %v2987_v49 = vld [vmem:[#allocation3 + $0x3a4] sm:$0xf] }
  0x38   :  { %514 = vmatpush.bf16.msrb.mxu0 %v2106_v40  ;;  %v2435_v42 = vor.u32 %v2965_v39, %v2434_v38  ;;  %v2997_v48 = vld [vmem:[#allocation3 + $0x3ec] sm:$0xf0]  ;;  %v2418_v56 = vld [vmem:[#allocation3 + $0x2c0] sm:$0xf]  ;;  %v2959_v60 = vld [vmem:[#allocation3 + $0x2c4] sm:$0xf] }
  0x39   :  { %542 = vmatpush.bf16.msrb.mxu2 %v2110_v41  ;;  %v2961_v57 = vld [vmem:[#allocation3 + $0x2cc] sm:$0xf0]  ;;  %v2420_v61 = vld [vmem:[#allocation3 + $0x2d0] sm:$0xf0]  ;;  %v2546_v63 = vld [vmem:[#allocation3 + $0x3c0] sm:$0xf] }
  0x3a   :  { %556 = vmatpush.bf16.msrb.mxu3 %v2238_v43  ;;  %528 = vmatpush.bf16.msrb.mxu1 %v2234_v47  ;;  %v2963_v43 = vld [vmem:[#allocation3 + $0x2e4] sm:$0xf]  ;;  %v2562_v47 = vld [vmem:[#allocation3 + $0x3e0] sm:$0xf]  ;;  %v2516_v5 = vld [vmem:[#allocation3 + $0x390] sm:$0xf0] }
  0x3b   :  { %v2439_v46 = vor.u32 %v2963_v43, %v2436_v44  ;;  %v2402_v10 = vld [vmem:[#allocation3 + $0x2a0] sm:$0xf]  ;;  %v2953_v33 = vld [vmem:[#allocation3 + $0x28c] sm:$0xf0]  ;;  %v2951_v34 = vld [vmem:[#allocation3 + $0x284] sm:$0xf] }
  0x3c   :  { %515 = vmatpush.bf16.msrb.mxu0 %v2090_v52  ;;  %v2563_v52 = vor.u32 %v2997_v48, %v2562_v47  ;;  %v2388_v38 = vld [vmem:[#allocation3 + $0x290] sm:$0xf0]  ;;  %v2514_v43 = vld [vmem:[#allocation3 + $0x380] sm:$0xf]  ;;  %v2985_v44 = vld [vmem:[#allocation3 + $0x38c] sm:$0xf0] }
  0x3d   :  { %543 = vmatpush.bf16.msrb.mxu2 %v2094_v53  ;;  %v2532_v53 = vld [vmem:[#allocation3 + $0x3b0] sm:$0xf0] }
  0x3e   :  { %557 = vmatpush.bf16.msrb.mxu3 %v2222_v55  ;;  %529 = vmatpush.bf16.msrb.mxu1 %v2218_v59  ;;  %v2535_v55 = vor.u32 %v2987_v49, %v2532_v53  ;;  %v2419_v59 = vor.u32 %v2961_v57, %v2418_v56  ;;  %v2515_v49 = vor.u32 %v2985_v44, %v2514_v43 }
  0x40   :  { %516 = vmatpush.bf16.msrb.mxu0 %v2074_v1  ;;  %v2993_v1 = vld [vmem:[#allocation3 + $0x3cc] sm:$0xf0] }
  0x41   :  { %544 = vmatpush.bf16.msrb.mxu2 %v2078_v2  ;;  %v2423_v2 = vor.u32 %v2959_v60, %v2420_v61  ;;  %v2547_v3 = vor.u32 %v2993_v1, %v2546_v63  ;;  %v2947_v63 = vld [vmem:[#allocation3 + $0x264] sm:$0xf]  ;;  %v2372_v1 = vld [vmem:[#allocation3 + $0x270] sm:$0xf0] }
  0x42   :  { %558 = vmatpush.bf16.msrb.mxu3 %v2206_v4  ;;  %530 = vmatpush.bf16.msrb.mxu1 %v2202_v8  ;;  %v2983_v4 = vld [vmem:[#allocation3 + $0x384] sm:$0xf] }
  0x43   :  { %v2519_v9 = vor.u32 %v2983_v4, %v2516_v5  ;;  %v2973_v5 = vld [vmem:[#allocation3 + $0x32c] sm:$0xf0] }
  0x44   :  { %517 = vmatpush.bf16.msrb.mxu0 %v2058_v13  ;;  %v2957_v13 = vld [vmem:[#allocation3 + $0x2ac] sm:$0xf0] }
  0x45   :  { %545 = vmatpush.bf16.msrb.mxu2 %v2062_v14  ;;  %v2955_v14 = vld [vmem:[#allocation3 + $0x2a4] sm:$0xf] }
  0x46   :  { %559 = vmatpush.bf16.msrb.mxu3 %v2190_v16  ;;  %531 = vmatpush.bf16.msrb.mxu1 %v2186_v17  ;;  %v2403_v16 = vor.u32 %v2957_v13, %v2402_v10  ;;  %v2404_v17 = vld [vmem:[#allocation3 + $0x2b0] sm:$0xf0]  ;;  %v2375_v13 = vor.u32 %v2947_v63, %v2372_v1  ;;  %v2466_v63 = vld [vmem:[#allocation3 + $0x320] sm:$0xf] }
  0x47   :  { %518 = vmatmul.bf16.vlgmr.msrb.gmra.mxu0 %v3249_v0 }
  0x48   :  { %546 = vmatmul.bf16.vlgmr.msrb.gmra.mxu2 %v3249_v0  ;;  %v2995_v0 = vld [vmem:[#allocation3 + $0x3e4] sm:$0xf]  ;;  %1117 = vmatpush.bf16.msra.mxu0 %v2435_v42  ;;  %v2391_v42 = vor.u32 %v2951_v34, %v2388_v38 }
  0x49   :  { %560 = vmatmul.bf16.vlgmr.msrb.gmra.mxu3 %v3253_v15  ;;  %532 = vmatmul.bf16.vlgmr.msrb.gmra.mxu1 %v3253_v15  ;;  %v2567_v29 = vor.u32 %v2995_v0, %v2564_v27  ;;  %v118_v0 = vperm.slane %v3264_v18, 2  ;;  %v2407_v27 = vor.u32 %v2955_v14, %v2404_v17  ;;  %v2468_v14 = vld [vmem:[#allocation3 + $0x330] sm:$0xf0] }
  0x4a   :  { %1145 = vmatpush.bf16.msra.mxu2 %v2439_v46  ;;  %1131 = vmatpush.bf16.msra.mxu1 %v2563_v52 }
  0x4b   :  { %1159 = vmatpush.bf16.msra.mxu3 %v2567_v29  ;;  %v2500_v29 = vld [vmem:[#allocation3 + $0x370] sm:$0xf0] }
  0x4c   :  { %1118 = vmatpush.bf16.msra.mxu0 %v2419_v59  ;;  %v2949_v59 = vld [vmem:[#allocation3 + $0x26c] sm:$0xf0] }
  0x4e   :  { %1146 = vmatpush.bf16.msra.mxu2 %v2423_v2  ;;  %1132 = vmatpush.bf16.msra.mxu1 %v2547_v3  ;;  %v2498_v2 = vld [vmem:[#allocation3 + $0x360] sm:$0xf] }
  0x4f   :  { %1160 = vmatpush.bf16.msra.mxu3 %v2551_v35 }
  0x50   :  { %1119 = vmatpush.bf16.msra.mxu0 %v2403_v16 }
  0x52   :  { %1147 = vmatpush.bf16.msra.mxu2 %v2407_v27  ;;  %v2943_v27 = vld [vmem:[#allocation3 + $0x244] sm:$0xf] }
  0x53   :  { %1161 = vmatpush.bf16.msra.mxu3 %v2535_v55 }
  0x56   :  { %1148 = vmatpush.bf16.msra.mxu2 %v2391_v42 }
  0x57   :  { %1162 = vmatpush.bf16.msra.mxu3 %v2519_v9 }
  0x5a   :  { %1149 = vmatpush.bf16.msra.mxu2 %v2375_v13  ;;  %v2556_v13 = vld [vmem:[#allocation3 + $0x3d8] sm:$0xf0] }
  0xa4   :  { %v463_v20 = vpop.f32.mrf.mxu0 }
  0xa5   :  { %v464_v21 = vadd.f32 %v463_v20, %v116_v19  ;;  %v2989_v20 = vld [vmem:[#allocation3 + $0x3ac] sm:$0xf0] }
  0xa8   :  { %v477_v23 = vpop.f32.mrf.mxu1 }
  0xa9   :  { %v478_v24 = vadd.f32 %v477_v23, %v464_v21 }
  0xab   :  { %v491_v25 = vpop.f32.mrf.mxu2  ;;  %v2303_v28 = vmul.f32 -1.442695, %v478_v24  ;;  %v2979_v24 = vld [vmem:[#allocation3 + $0x364] sm:$0xf] }
  0xac   :  { %v492_v26 = vadd.f32 %v491_v25, %v117_v22  ;;  %v465_v15 = vpop.f32.mrf.mxu0 }
  0xad   :  { %3068 = vpow2.f32 %v2303_v28  ;;  %v466_v31 = vadd.f32 %v465_v15, %v116_v19  ;;  %v2530_v19 = vld [vmem:[#allocation3 + $0x3a0] sm:$0xf] }
  0xae   :  { %v505_v30 = vpop.f32.mrf.mxu3  ;;  %v2531_v28 = vor.u32 %v2989_v20, %v2530_v19  ;;  %v2386_v15 = vld [vmem:[#allocation3 + $0x280] sm:$0xf]  ;;  %v2945_v20 = vld [vmem:[#allocation3 + $0x24c] sm:$0xf0] }
  0xaf   :  { %v506_v32 = vadd.f32 %v505_v30, %v492_v26  ;;  %v2354_v19 = vld [vmem:[#allocation3 + $0x240] sm:$0xf] }
  0xb0   :  { %v479_v37 = vpop.f32.mrf.mxu1  ;;  %1133 = vmatpush.bf16.msra.mxu1 %v2531_v28  ;;  %v2356_v28 = vld [vmem:[#allocation3 + $0x250] sm:$0xf0]  ;;  %v2355_v42 = vor.u32 %v2945_v20, %v2354_v19  ;;  %v2467_v19 = vor.u32 %v2973_v5, %v2466_v63  ;;  %v2937_v20 = vld [vmem:[#allocation3 + $0x20c] sm:$0xf0]  ;;  %v2994_v63 = vld [vmem:[#allocation3 + $0x3d4] sm:$0xf0] }
  0xb1   :  { %v2305_v36 = vmul.f32 -1.442695, %v506_v32  ;;  %v480_v40 = vadd.f32 %v479_v37, %v466_v31  ;;  %v119_v32 = vperm.slane %v3264_v18, 3  ;;  %v2359_v43 = vor.u32 %v2943_v27, %v2356_v28  ;;  %v2442_v28 = vld [vmem:[#allocation3 + $0x2e8] sm:$0xf] }
  0xb2   :  { %v2570_v18 = vld [vmem:[#allocation3 + $0x3e8] sm:$0xf] }
  0xb3   :  { %v493_v41 = vpop.f32.mrf.mxu2  ;;  %3070 = vpow2.f32 %v2305_v36  ;;  %v3069_v50 = vpop.eup %3068  ;;  %v2304_v51 = vmul.f32 -1.442695, %v480_v40  ;;  %v2503_v40 = vor.u32 %v2979_v24, %v2500_v29  ;;  %1150 = vmatpush.bf16.msra.mxu2 %v2359_v43  ;;  %v2966_v29 = vld [vmem:[#allocation3 + $0x2f4] sm:$0xf0] }
  0xb4   :  { %v494_v45 = vadd.f32 %v493_v41, %v117_v22  ;;  %v3268_v54 = vadd.f32 1.0, %v3069_v50  ;;  %v2387_v41 = vor.u32 %v2953_v33, %v2386_v15  ;;  %v2975_v50 = vld [vmem:[#allocation3 + $0x344] sm:$0xf]  ;;  %1134 = vmatpush.bf16.msra.mxu1 %v2515_v49  ;;  %v2443_v43 = vor.u32 %v2966_v29, %v2442_v28  ;;  %v2508_v28 = vld [vmem:[#allocation3 + $0x378] sm:$0xf0] }
  0xb5   :  { %3072 = vpow2.f32 %v2304_v51  ;;  %v2484_v51 = vld [vmem:[#allocation3 + $0x350] sm:$0xf0]  ;;  %1163 = vmatpush.bf16.msra.mxu3 %v2503_v40 }
  0xb6   :  { %v507_v58 = vpop.f32.mrf.mxu3  ;;  %3074 = vrcp.f32 %v3268_v54  ;;  %v585_v8 = vand.u32 2147483647, %v3268_v54  ;;  %v587_v12 = vand.u32 2147483648, %v3268_v54  ;;  %vm581_vm0 = vweird.f32 %v3268_v54  ;;  %1120 = vmatpush.bf16.msra.mxu0 %v2387_v41 }
  0xb7   :  { %v508_v62 = vadd.f32 %v507_v58, %v494_v45  ;;  %v2487_v57 = vor.u32 %v2975_v50, %v2484_v51  ;;  %v2370_v58 = vld [vmem:[#allocation3 + $0x260] sm:$0xf]  ;;  %v2412_v51 = vld [vmem:[#allocation3 + $0x2b8] sm:$0xf0] }
  0xb8   :  { %vm3286_vm1 = vcmp.eq.f32.partialorder %v585_v8, 8.507059e+37  ;;  %v3294_v36 = vor.u32 1.1754944e-38, %v587_v12 }
  0xb9   :  { %v3071_v6 = vpop.eup %3070  ;;  %v2306_v7 = vmul.f32 -1.442695, %v508_v62  ;;  %v2371_v62 = vor.u32 %v2949_v59, %v2370_v58  ;;  %1164 = vmatpush.bf16.msra.mxu3 %v2487_v57  ;;  %v2338_v57 = vld [vmem:[#allocation3 + $0x220] sm:$0xf]  ;;  %v2941_v58 = vld [vmem:[#allocation3 + $0x22c] sm:$0xf0] }
  0xba   :  { %v3272_v11 = vadd.f32 1.0, %v3071_v6  ;;  %v2981_v6 = vld [vmem:[#allocation3 + $0x36c] sm:$0xf0] }
  0xbb   :  { %3076 = vpow2.f32 %v2306_v7  ;;  %v3073_v21 = vpop.eup %3072  ;;  %v2971_v7 = vld [vmem:[#allocation3 + $0x324] sm:$0xf]  ;;  %1121 = vmatpush.bf16.msra.mxu0 %v2371_v62  ;;  %v2499_v24 = vor.u32 %v2981_v6, %v2498_v2  ;;  %v2340_v62 = vld [vmem:[#allocation3 + $0x230] sm:$0xf0]  ;;  %v2992_v6 = vld [vmem:[#allocation3 + $0x3cc] sm:$0xf] }
  0xbc   :  { %3078 = vrcp.f32 %v3272_v11  ;;  %v625_v22 = vand.u32 2147483648, %v3272_v11  ;;  %v623_v23 = vand.u32 2147483647, %v3272_v11  ;;  %v3278_v25 = vpop.eup %3074  ;;  %v3280_v26 = vadd.f32 1.0, %v3073_v21 }
  0xbd   :  { %v577_v30 = vmul.f32 %v3278_v25, %v3268_v54  ;;  %vm582_vm2 = vweird.f32 %v3278_v25  ;;  %vm619_vm4 = vweird.f32 %v3272_v11  ;;  %v2471_v38 = vor.u32 %v2971_v7, %v2468_v14  ;;  %1135 = vmatpush.bf16.msra.mxu1 %v2499_v24  ;;  %v2322_v14 = vld [vmem:[#allocation3 + $0x200] sm:$0xf] }
  0xbe   :  { %v3291_v35 = vor.u32 1.1754944e-38, %v625_v22  ;;  %3080 = vrcp.f32 %v3280_v26  ;;  %v600_v37 = vand.u32 2147483647, %v3280_v26  ;;  %vm3298_vm3 = vcmp.eq.f32.partialorder %v623_v23, 8.507059e+37  ;;  %vm3321_vm7 = vmor %vm581_vm0, %vm582_vm2 }
  0xbf   :  { %v578_v39 = vsub.f32 1.0, %v577_v30  ;;  %v602_v48 = vand.u32 2147483648, %v3280_v26  ;;  %vm596_vm5 = vweird.f32 %v3280_v26  ;;  %1165 = vmatpush.bf16.msra.mxu3 %v2471_v38  ;;  %1122 = vmatpush.bf16.msra.mxu0 %v2355_v42 }
  0xc0   :  { %vm3364_vm10 = vcmp.eq.f32.partialorder %v600_v37, 8.507059e+37 }
  0xc1   :  { %v3077_v45 = vpop.eup %3076  ;;  %v579_v56 = vmul.f32 %v3278_v25, %v578_v39  ;;  %v3333_v54 = vor.u32 1.1754944e-38, %v602_v48  ;;  %v2482_v39 = vld [vmem:[#allocation3 + $0x340] sm:$0xf]  ;;  %v2996_v48 = vld [vmem:[#allocation3 + $0x3ec] sm:$0xf] }
  0xc2   :  { %v3303_v52 = vpop.eup %3078  ;;  %v3305_v53 = vadd.f32 1.0, %v3077_v45  ;;  %v2967_v45 = vld [vmem:[#allocation3 + $0x304] sm:$0xf] }
  0xc3   :  { %v615_v60 = vmul.f32 %v3303_v52, %v3272_v11  ;;  %vm620_vm6 = vweird.f32 %v3303_v52  ;;  %v580_v10 = vadd.f32 %v3278_v25, %v579_v56  ;;  %v2977_v11 = vld [vmem:[#allocation3 + $0x34c] sm:$0xf0]  ;;  %v2572_v56 = vld [vmem:[#allocation3 + $0x3f8] sm:$0xf0] }
  0xc4   :  { %v519_v46 = vpop.f32.mrf.mxu0  ;;  %3082 = vrcp.f32 %v3305_v53  ;;  %v640_v3 = vand.u32 2147483648, %v3305_v53  ;;  %v3325_v8 = vpop.eup %3080  ;;  %v638_v12 = vand.u32 2147483647, %v3305_v53  ;;  %vm3344_vm9 = vmor %vm619_vm4, %vm620_vm6  ;;  %v2483_v44 = vor.u32 %v2977_v11, %v2482_v39  ;;  %v2444_v39 = vld [vmem:[#allocation3 + $0x2f8] sm:$0xf0] }
  0xc5   :  { %v520_v55 = vadd.f32 %v519_v46, %v118_v0  ;;  %v616_v9 = vsub.f32 1.0, %v615_v60  ;;  %v592_v16 = vmul.f32 %v3325_v8, %v3280_v26  ;;  %v584_v22 = vsel %vm3321_vm7, %v3278_v25, %v580_v10  ;;  %v566_v25 = vld [vmem:[%s3745_s2] sm:$0xff]  ;;  %v2450_v11 = vld [vmem:[#allocation3 + $0x300] sm:$0xf] }
  0xc6   :  { %v533_v61 = vpop.f32.mrf.mxu1  ;;  %v3331_v17 = vor.u32 1.1754944e-38, %v640_v3  ;;  %vm597_vm8 = vweird.f32 %v3325_v8  ;;  %v589_v30 = vsel %vm3286_vm1, %v3294_v36, %v584_v22  ;;  %v2452_v46 = vld [vmem:[#allocation3 + $0x310] sm:$0xf0]  ;;  %v2575_v37 = vor.u32 %v2996_v48, %v2572_v56  ;;  %1136 = vmatpush.bf16.msra.mxu1 %v2483_v44  ;;  %v2962_v56 = vld [vmem:[#allocation3 + $0x2d4] sm:$0xf0] }
  0xc7   :  { %v534_v4 = vadd.f32 %v533_v61, %v520_v55  ;;  %v617_v21 = vmul.f32 %v3303_v52, %v616_v9  ;;  %v593_v15 = vsub.f32 1.0, %v592_v16  ;;  %v2455_v55 = vor.u32 %v2967_v45, %v2452_v46  ;;  %v2939_v61 = vld [vmem:[#allocation3 + $0x224] sm:$0xf]  ;;  %vm3382_vm13 = vmor %vm596_vm5, %vm597_vm8  ;;  %v2324_v22 = vld [vmem:[#allocation3 + $0x210] sm:$0xf0] }
  0xc8   :  { %vm634_vm12 = vweird.f32 %v3305_v53  ;;  %v2339_v10 = vor.u32 %v2941_v58, %v2338_v57  ;;  %v2343_v16 = vor.u32 %v2939_v61, %v2340_v62  ;;  %v2988_v45 = vld [vmem:[#allocation3 + $0x3ac] sm:$0xf]  ;;  %vm639_vm15 = vcmp.eq.f32.partialorder %v638_v12, 8.507059e+37  ;;  %v2554_v62 = vld [vmem:[#allocation3 + $0x3c8] sm:$0xf] }
  0xc9   :  { %3084 = vtanh.f32 %v534_v4  ;;  %v618_v40 = vadd.f32 %v3303_v52, %v617_v21  ;;  %v594_v50 = vmul.f32 %v3325_v8, %v593_v15  ;;  %1166 = vmatpush.bf16.msra.mxu3 %v2455_v55  ;;  %v2935_v21 = vld [vmem:[#allocation3 + $0x204] sm:$0xf]  ;;  %v2964_v15 = vld [vmem:[#allocation3 + $0x2ec] sm:$0xf]  ;;  %v2426_v55 = vld [vmem:[#allocation3 + $0x2c8] sm:$0xf]  ;;  %v2555_v5 = vor.u32 %v2994_v63, %v2554_v62 }
  0xca   :  { %v3357_v49 = vpop.eup %3082  ;;  %1123 = vmatpush.bf16.msra.mxu0 %v2339_v10  ;;  %1151 = vmatpush.bf16.msra.mxu2 %v2343_v16  ;;  %v2327_v38 = vor.u32 %v2935_v21, %v2324_v22  ;;  %v2447_v44 = vor.u32 %v2964_v15, %v2444_v39  ;;  %v2427_v61 = vor.u32 %v2962_v56, %v2426_v55  ;;  %v2956_v9 = vld [vmem:[#allocation3 + $0x2ac] sm:$0xf]  ;;  %v2990_v22 = vld [vmem:[#allocation3 + $0x3b4] sm:$0xf0]  ;;  %v2394_v15 = vld [vmem:[#allocation3 + $0x288] sm:$0xf] }
  0xcb   :  { %v547_v23 = vpop.f32.mrf.mxu2  ;;  %v630_v59 = vmul.f32 %v3357_v49, %v3305_v53  ;;  %vm635_vm11 = vweird.f32 %v3357_v49  ;;  %v595_v26 = vadd.f32 %v3325_v8, %v594_v50  ;;  %1137 = vmatpush.bf16.msra.mxu1 %v2467_v19  ;;  %v2540_v50 = vld [vmem:[#allocation3 + $0x3b8] sm:$0xf0]  ;;  %v2538_v19 = vld [vmem:[#allocation3 + $0x3a8] sm:$0xf]  ;;  %v2946_v63 = vld [vmem:[#allocation3 + $0x254] sm:$0xf0] }
  0xcc   :  { %v548_v33 = vadd.f32 %v547_v23, %v119_v32  ;;  %v561_v34 = vpop.f32.mrf.mxu3  ;;  %v521_v41 = vpop.f32.mrf.mxu0  ;;  %vm3388_vm14 = vmor %vm634_vm12, %vm635_vm11  ;;  %v2543_v58 = vor.u32 %v2988_v45, %v2540_v50  ;;  %v2522_v39 = vld [vmem:[#allocation3 + $0x388] sm:$0xf]  ;;  %v2380_v56 = vld [vmem:[#allocation3 + $0x278] sm:$0xf0] }
  0xcd   :  { %v522_v36 = vadd.f32 %v521_v41, %v118_v0  ;;  %v622_v0 = vsel %vm3344_vm9, %v3303_v52, %v618_v40  ;;  %v631_v7 = vsub.f32 1.0, %v630_v59  ;;  %1215 = vmatpush.bf16.msrb.mxu3 %v2575_v37  ;;  %v2969_v40 = vld [vmem:[#allocation3 + $0x30c] sm:$0xf0]  ;;  %v599_v46 = vsel %vm3382_vm13, %v3325_v8, %v595_v26  ;;  %v2960_v59 = vld [vmem:[#allocation3 + $0x2cc] sm:$0xf] }
  0xce   :  { %v562_v31 = vadd.f32 %v561_v34, %v548_v33  ;;  %v535_v60 = vpop.f32.mrf.mxu1  ;;  %v627_v2 = vsel %vm3298_vm3, %v3291_v35, %v622_v0  ;;  %v2559_v33 = vor.u32 %v2992_v6, %v2556_v13  ;;  %v2323_v34 = vor.u32 %v2937_v20, %v2322_v14  ;;  %v2428_v0 = vld [vmem:[#allocation3 + $0x2d8] sm:$0xf0]  ;;  %1152 = vmatpush.bf16.msra.mxu2 %v2327_v38  ;;  %v2410_v6 = vld [vmem:[#allocation3 + $0x2a8] sm:$0xf]  ;;  %v2933_v14 = vld [vmem:[#allocation2 + $0x4] sm:$0xf] }
  0xcf   :  { %v3085_v1 = vpop.eup %3084  ;;  %v536_v4 = vadd.f32 %v535_v60, %v522_v36  ;;  %v684_v35 = vmul.f32 %v627_v2, %v566_v25  ;;  %v632_v23 = vmul.f32 %v3357_v49, %v631_v7  ;;  %v567_v25 = vld [vmem:[%s3745_s2 + $0x8] sm:$0xff]  ;;  %v604_v53 = vsel %vm3364_vm10, %v3333_v54, %v599_v46  ;;  %v2378_v45 = vld [vmem:[#allocation3 + $0x268] sm:$0xf] }
  0xd0   :  { %v2307_v3 = vmul.f32 -1.442695, %v562_v31  ;;  %v686_v47 = vmul.f32 %v3085_v1, %v589_v30  ;;  %v2451_v31 = vor.u32 %v2969_v40, %v2450_v11  ;;  %1124 = vmatpush.bf16.msra.mxu0 %v2323_v34  ;;  %v2958_v7 = vld [vmem:[#allocation3 + $0x2b4] sm:$0xf0]  ;;  %v2316_v26 = vld [vmem:[#allocation2 + $0x8] sm:$0xf0]  ;;  %v2415_v20 = vor.u32 %v2956_v9, %v2412_v51 }
  0xd1   :  { %v633_v41 = vadd.f32 %v3357_v49, %v632_v23  ;;  %1216 = vmatpush.bf16.msrb.mxu3 %v2559_v33  ;;  %v2411_v13 = vor.u32 %v2958_v7, %v2410_v6  ;;  %v3429_v21 = vor.u32 %v2933_v14, %v2316_v26  ;;  %v2539_v23 = vor.u32 %v2990_v22, %v2538_v19  ;;  %v2952_v34 = vld [vmem:[#allocation3 + $0x28c] sm:$0xf]  ;;  %v2396_v38 = vld [vmem:[#allocation3 + $0x298] sm:$0xf0]  ;;  %v2950_v46 = vld [vmem:[#allocation3 + $0x274] sm:$0xf0] }
  0xd2   :  { %3086 = vpow2.f32 %v2307_v3  ;;  %v3394_v24 = vadd.f32 %v686_v47, %v684_v35  ;;  %1201 = vmatpush.bf16.msrb.mxu2 %v2447_v44  ;;  %1138 = vmatpush.bf16.msra.mxu1 %v2451_v31  ;;  %v2984_v3 = vld [vmem:[#allocation3 + $0x38c] sm:$0xf]  ;;  %v2589_v47 = vld [vmem:[%s3744_s1 + $0x28] sm:$0xff]  ;;  %v2379_v55 = vor.u32 %v2950_v46, %v2378_v45  ;;  %v2362_v62 = vld [vmem:[#allocation3 + $0x248] sm:$0xf] }
  0xd3   :  { %3088 = vtanh.f32 %v536_v4  ;;  %v549_v27 = vpop.f32.mrf.mxu2  ;;  %v637_v57 = vsel %vm3388_vm14, %v3357_v49, %v633_v41  ;;  %v2431_v49 = vor.u32 %v2960_v59, %v2428_v0  ;;  %v2524_v4 = vld [vmem:[#allocation3 + $0x398] sm:$0xf0]  ;;  %v1372_v16 = vpack.c.bf16 %v2589_v47, %v2589_v47  ;;  %1167 = vmatmul.bf16.vlgmr.msra.gmra.mxu3 %v3429_v21  ;;  %v2948_v31 = vld [vmem:[#allocation3 + $0x26c] sm:$0xf]  ;;  %v2982_v0 = vld [vmem:[#allocation3 + $0x374] sm:$0xf0] }
  0xd4   :  { %v550_v30 = vadd.f32 %v549_v27, %v119_v32  ;;  %696 = vst [vmem:[%s3749_s6] sm:$0xff] %v3394_v24  ;;  %v563_v42 = vpop.f32.mrf.mxu3  ;;  %v2998_v32 = vld [vmem:[#allocation3 + $0x3f4] sm:$0xf0]  ;;  %v642_v8 = vsel %vm639_vm15, %v3331_v17, %v637_v57  ;;  %1173 = vmatpush.bf16.msrb.mxu0 %v2443_v43  ;;  %v2588_v17 = vld [vmem:[%s3744_s1 + $0x20] sm:$0xff]  ;;  %v2527_v54 = vor.u32 %v2984_v3, %v2524_v4  ;;  %v2980_v27 = vld [vmem:[#allocation3 + $0x36c] sm:$0xf] }
  0xd5   :  { %v2571_v36 = vor.u32 %v2998_v32, %v2570_v18  ;;  %v685_v12 = vmul.f32 %v642_v8, %v567_v25  ;;  %v1371_v35 = vpack.c.bf16 %v2588_v17, %v2588_v17  ;;  %1217 = vmatpush.bf16.msrb.mxu3 %v2543_v58  ;;  %1374 = vst [vmem:[#allocation2 + $0xc] sm:$0xf] %v1372_v16  ;;  %v2954_v25 = vld [vmem:[#allocation3 + $0x294] sm:$0xf0]  ;;  %v2976_v43 = vld [vmem:[#allocation3 + $0x34c] sm:$0xf] }
  0xd6   :  { %v564_v48 = vadd.f32 %v563_v42, %v550_v30  ;;  %1202 = vmatpush.bf16.msrb.mxu2 %v2431_v49  ;;  %v2511_v29 = vor.u32 %v2980_v27, %v2508_v28  ;;  %1139 = vmatmul.bf16.vlgmr.msra.gmra.mxu1 %v3429_v21  ;;  %v2395_v33 = vor.u32 %v2954_v25, %v2394_v15  ;;  %v2986_v42 = vld [vmem:[#allocation3 + $0x394] sm:$0xf0]  ;;  %v2492_v32 = vld [vmem:[#allocation3 + $0x358] sm:$0xf0]  ;;  %v2506_v57 = vld [vmem:[#allocation3 + $0x368] sm:$0xf] }
  0xd7   :  { %1187 = vmatpush.bf16.msrb.mxu1 %v2571_v36  ;;  %1373 = vst [vmem:[#allocation2 + $0x4] sm:$0xf] %v1371_v35  ;;  %v2399_v41 = vor.u32 %v2952_v34, %v2396_v38  ;;  %v2523_v18 = vor.u32 %v2986_v42, %v2522_v39  ;;  %v2495_v50 = vor.u32 %v2976_v43, %v2492_v32  ;;  %v2978_v4 = vld [vmem:[#allocation3 + $0x354] sm:$0xf0]  ;;  %v2968_v17 = vld [vmem:[#allocation3 + $0x30c] sm:$0xf] }
  0xd8   :  { %v3087_v60 = vpop.eup %3086  ;;  %v2308_v37 = vmul.f32 -1.442695, %v564_v48  ;;  %1174 = vmatpush.bf16.msrb.mxu0 %v2427_v61  ;;  %v2383_v59 = vor.u32 %v2948_v31, %v2380_v56  ;;  %v2476_v61 = vld [vmem:[#allocation3 + $0x338] sm:$0xf0]  ;;  %v2363_v3 = vor.u32 %v2946_v63, %v2362_v62  ;;  %v2346_v9 = vld [vmem:[#allocation3 + $0x228] sm:$0xf] }
  0xd9   :  { %v3089_v1 = vpop.eup %3088  ;;  %v3415_v2 = vadd.f32 1.0, %v3087_v60  ;;  %1218 = vmatpush.bf16.msrb.mxu3 %v2527_v54  ;;  %v2972_v60 = vld [vmem:[#allocation3 + $0x32c] sm:$0xf]  ;;  %v2942_v35 = vld [vmem:[#allocation3 + $0x234] sm:$0xf0] }
  0xda   :  { %v687_v52 = vmul.f32 %v3089_v1, %v604_v53  ;;  %3090 = vpow2.f32 %v2308_v37  ;;  %1203 = vmatpush.bf16.msrb.mxu2 %v2415_v20  ;;  %v2507_v37 = vor.u32 %v2982_v0, %v2506_v57  ;;  %v2479_v1 = vor.u32 %v2972_v60, %v2476_v61  ;;  %v2944_v53 = vld [vmem:[#allocation3 + $0x24c] sm:$0xf]  ;;  %v2474_v19 = vld [vmem:[#allocation3 + $0x328] sm:$0xf]  ;;  %v2974_v20 = vld [vmem:[#allocation3 + $0x334] sm:$0xf0] }
  0xdb   :  { %3092 = vrcp.f32 %v3415_v2  ;;  %1188 = vmatpush.bf16.msrb.mxu1 %v2555_v5  ;;  %v663_v48 = vand.u32 2147483647, %v3415_v2  ;;  %v665_v58 = vand.u32 2147483648, %v3415_v2  ;;  %vm659_vm1 = vweird.f32 %v3415_v2  ;;  %v2940_v47 = vld [vmem:[#allocation3 + $0x22c] sm:$0xf] }
  0xdc   :  { %v3427_v10 = vadd.f32 %v687_v52, %v685_v12  ;;  %1175 = vmatpush.bf16.msrb.mxu0 %v2411_v13  ;;  %v2364_v12 = vld [vmem:[#allocation3 + $0x258] sm:$0xf0]  ;;  %v2347_v28 = vor.u32 %v2942_v35, %v2346_v9  ;;  %v2330_v25 = vld [vmem:[#allocation3 + $0x208] sm:$0xf]  ;;  %v2475_v38 = vor.u32 %v2974_v20, %v2474_v19  ;;  %v2936_v39 = vld [vmem:[#allocation3 + $0x20c] sm:$0xf] }
  0xdd   :  { %1219 = vmatpush.bf16.msrb.mxu3 %v2511_v29  ;;  %v2460_v52 = vld [vmem:[#allocation3 + $0x318] sm:$0xf0]  ;;  %v666_v6 = vor.u32 1.1754944e-38, %v665_v58  ;;  %v2367_v7 = vor.u32 %v2944_v53, %v2364_v12  ;;  %vm664_vm3 = vcmp.eq.f32.partialorder %v663_v48, 8.507059e+37  ;;  %v3470_v56 = vld [vmem:[%s3747_s4 + $0x4] sm:$0xf] }
  0xde   :  { %697 = vst [vmem:[%s3749_s6 + $0x8] sm:$0xff] %v3427_v10  ;;  %1204 = vmatpush.bf16.msrb.mxu2 %v2399_v41  ;;  %v2348_v13 = vld [vmem:[#allocation3 + $0x238] sm:$0xf0]  ;;  %v2463_v16 = vor.u32 %v2968_v17, %v2460_v52  ;;  %v2458_v41 = vld [vmem:[#allocation3 + $0x308] sm:$0xf]  ;;  %v779_v60 = vperm.slane %v3470_v56, 0 }
  0xdf   :  { %1189 = vmatpush.bf16.msrb.mxu1 %v2539_v23  ;;  %v2351_v15 = vor.u32 %v2940_v47, %v2348_v13  ;;  %v3061_v57 = vld [vmem:[#allocation3 + $0x5e4] sm:$0xf]  ;;  %v2843_v58 = vld [vmem:[#allocation3 + $0x5f0] sm:$0xf0]  ;;  %v2713_v63 = vld [vmem:[#allocation3 + $0x4e0] sm:$0xf] }
  0xe0   :  { %v3091_v30 = vpop.eup %3090  ;;  %1176 = vmatpush.bf16.msrb.mxu0 %v2395_v33  ;;  %v2846_v0 = vor.u32 %v3061_v57, %v2843_v58  ;;  %v3029_v53 = vld [vmem:[#allocation3 + $0x4e4] sm:$0xf]  ;;  %v2841_v52 = vld [vmem:[#allocation3 + $0x5e0] sm:$0xf]  ;;  %v3027_v13 = vld [vmem:[#allocation3 + $0x4cc] sm:$0xf0] }
  0xe1   :  { %v3437_v11 = vpop.eup %3092  ;;  %v3439_v40 = vadd.f32 1.0, %v3091_v30  ;;  %1220 = vmatpush.bf16.msrb.mxu3 %v2495_v50  ;;  %v2938_v30 = vld [vmem:[#allocation3 + $0x214] sm:$0xf0]  ;;  %v2697_v47 = vld [vmem:[#allocation3 + $0x4c0] sm:$0xf] }
  0xe2   :  { %v655_v44 = vmul.f32 %v3437_v11, %v3415_v2  ;;  %vm660_vm0 = vweird.f32 %v3437_v11  ;;  %1205 = vmatpush.bf16.msrb.mxu2 %v2383_v59  ;;  %v2331_v43 = vor.u32 %v2938_v30, %v2330_v25  ;;  %v2699_v19 = vld [vmem:[#allocation3 + $0x4d0] sm:$0xf0]  ;;  %v3049_v25 = vld [vmem:[#allocation3 + $0x584] sm:$0xf]  ;;  %v2665_v57 = vld [vmem:[#allocation3 + $0x480] sm:$0xf] }
  0xe3   :  { %3094 = vrcp.f32 %v3439_v40  ;;  %1190 = vmatpush.bf16.msrb.mxu1 %v2523_v18  ;;  %vm661_vm2 = vmor %vm659_vm1, %vm660_vm0  ;;  %v678_v27 = vand.u32 2147483647, %v3439_v40  ;;  %v680_v29 = vand.u32 2147483648, %v3439_v40  ;;  %vm674_vm5 = vweird.f32 %v3439_v40  ;;  %v2795_v30 = vld [vmem:[#allocation3 + $0x590] sm:$0xf0] }
  0xe4   :  { %v656_v36 = vsub.f32 1.0, %v655_v44  ;;  %3096 = vtanh.f32 %v3394_v24  ;;  %v2490_v24 = vld [vmem:[#allocation3 + $0x348] sm:$0xf]  ;;  %1177 = vmatpush.bf16.msrb.mxu0 %v2379_v55  ;;  %v3019_v58 = vld [vmem:[#allocation3 + $0x48c] sm:$0xf0] }
  0xe5   :  { %v2491_v2 = vor.u32 %v2978_v4, %v2490_v24  ;;  %1221 = vmatpush.bf16.msrb.mxu3 %v2479_v1  ;;  %3098 = vtanh.f32 %v3427_v10  ;;  %v2970_v10 = vld [vmem:[#allocation3 + $0x314] sm:$0xf0]  ;;  %v681_v44 = vor.u32 1.1754944e-38, %v680_v29  ;;  %vm679_vm7 = vcmp.eq.f32.partialorder %v678_v27, 8.507059e+37  ;;  %v3031_v1 = vld [vmem:[#allocation3 + $0x4ec] sm:$0xf0] }
  0xe6   :  { %v657_v8 = vmul.f32 %v3437_v11, %v656_v36  ;;  %1206 = vmatpush.bf16.msrb.mxu2 %v2367_v7  ;;  %v2459_v45 = vor.u32 %v2970_v10, %v2458_v41  ;;  %v780_v24 = vperm.slane %v3470_v56, 1  ;;  %v3059_v27 = vld [vmem:[#allocation3 + $0x5cc] sm:$0xf0] }
  0xe7   :  { %1191 = vmatpush.bf16.msrb.mxu1 %v2507_v37  ;;  %v2827_v37 = vld [vmem:[#allocation3 + $0x5d0] sm:$0xf0] }
  0xe8   :  { %v658_v49 = vadd.f32 %v3437_v11, %v657_v8  ;;  %1178 = vmatpush.bf16.msrb.mxu0 %v2363_v3  ;;  %v3057_v8 = vld [vmem:[#allocation3 + $0x5c4] sm:$0xf]  ;;  %v2715_v3 = vld [vmem:[#allocation3 + $0x4f0] sm:$0xf0] }
  0xe9   :  { %v3095_v5 = vpop.eup %3094  ;;  %1222 = vmatpush.bf16.msrb.mxu3 %v2463_v16  ;;  %v2830_v62 = vor.u32 %v3057_v8, %v2827_v37  ;;  %v2718_v17 = vor.u32 %v3029_v53, %v2715_v3  ;;  %v2698_v16 = vor.u32 %v3027_v13, %v2697_v47  ;;  %v2667_v8 = vld [vmem:[#allocation3 + $0x490] sm:$0xf0]  ;;  %v781_v37 = vperm.slane %v3470_v56, 2  ;;  %v2777_v13 = vld [vmem:[#allocation3 + $0x560] sm:$0xf] }
  0xea   :  { %v662_v54 = vsel %vm661_vm2, %v3437_v11, %v658_v49  ;;  %v670_v51 = vmul.f32 %v3095_v5, %v3439_v40  ;;  %v3097_v14 = vpop.eup %3096  ;;  %vm675_vm4 = vweird.f32 %v3095_v5  ;;  %v2332_v11 = vld [vmem:[#allocation3 + $0x218] sm:$0xf0]  ;;  %1207 = vmatpush.bf16.msrb.mxu2 %v2351_v15  ;;  %v2714_v49 = vor.u32 %v3031_v1, %v2713_v63  ;;  %v2793_v63 = vld [vmem:[#allocation3 + $0x580] sm:$0xf] }
  0xeb   :  { %v667_v26 = vsel %vm664_vm3, %v666_v6, %v662_v54  ;;  %1192 = vmatpush.bf16.msrb.mxu1 %v2491_v2  ;;  %vm676_vm6 = vmor %vm674_vm5, %vm675_vm4  ;;  %v2335_v18 = vor.u32 %v2936_v39, %v2332_v11  ;;  %v3099_v46 = vpop.eup %3098  ;;  %v3053_v6 = vld [vmem:[#allocation3 + $0x5a4] sm:$0xf]  ;;  %v2811_v54 = vld [vmem:[#allocation3 + $0x5b0] sm:$0xf0] }
  0xec   :  { %v692_v22 = vmul.f32 %v3097_v14, %v667_v26  ;;  %v671_v23 = vsub.f32 1.0, %v670_v51  ;;  %1179 = vmatpush.bf16.msrb.mxu0 %v2347_v28  ;;  %1223 = vmatmul.bf16.vlgmr.msrb.gmra.mxu3 %v3429_v21  ;;  %v2814_v2 = vor.u32 %v3053_v6, %v2811_v54  ;;  %v3025_v14 = vld [vmem:[#allocation3 + $0x4c4] sm:$0xf]  ;;  %v2651_v54 = vld [vmem:[#allocation3 + $0x470] sm:$0xf0] }
  0xed   :  { %1825 = vmatpush.bf16.msra.mxu3 %v2846_v0  ;;  %v3021_v39 = vld [vmem:[#allocation3 + $0x4a4] sm:$0xf] }
  0xee   :  { %694 = vst [vmem:[%s3748_s5] sm:$0xff] %v692_v22  ;;  %v698_v33 = vpack.c.bf16 %v692_v22, %v692_v22  ;;  %v672_v34 = vmul.f32 %v3095_v5, %v671_v23  ;;  %1208 = vmatpush.bf16.msrb.mxu2 %v2335_v18  ;;  %v2702_v22 = vor.u32 %v3025_v14, %v2699_v19  ;;  %v2825_v23 = vld [vmem:[#allocation3 + $0x5c0] sm:$0xf]  ;;  %v3055_v18 = vld [vmem:[#allocation3 + $0x5ac] sm:$0xf0] }
  0xef   :  { %1193 = vmatpush.bf16.msrb.mxu1 %v2475_v38  ;;  %v2826_v15 = vor.u32 %v3059_v27, %v2825_v23  ;;  %v3023_v38 = vld [vmem:[#allocation3 + $0x4ac] sm:$0xf0]  ;;  %v3037_v27 = vld [vmem:[#allocation3 + $0x524] sm:$0xf] }
  0xf0   :  { %700 = vst [vmem:[#allocation2] sm:$0xf] %v698_v33  ;;  %v673_v42 = vadd.f32 %v3095_v5, %v672_v34  ;;  %1180 = vmatpush.bf16.msrb.mxu0 %v2331_v43  ;;  %v2798_v33 = vor.u32 %v3049_v25, %v2795_v30  ;;  %v2681_v34 = vld [vmem:[#allocation3 + $0x4a0] sm:$0xf]  ;;  %v3047_v14 = vld [vmem:[#allocation3 + $0x56c] sm:$0xf0] }
  0xf1   :  { %1826 = vmatpush.bf16.msra.mxu3 %v2830_v62  ;;  %v2682_v10 = vor.u32 %v3023_v38, %v2681_v34  ;;  %v2778_v19 = vor.u32 %v3047_v14, %v2777_v13  ;;  %v2633_v30 = vld [vmem:[#allocation3 + $0x440] sm:$0xf]  ;;  %v3039_v14 = vld [vmem:[#allocation3 + $0x52c] sm:$0xf0] }
  0xf2   :  { %v677_v32 = vsel %vm676_vm6, %v3095_v5, %v673_v42  ;;  %v3063_v5 = vld [vmem:[#allocation3 + $0x5ec] sm:$0xf0]  ;;  %v2683_v42 = vld [vmem:[#allocation3 + $0x4b0] sm:$0xf0] }
  0xf3   :  { %v682_v48 = vsel %vm679_vm7, %v681_v44, %v677_v32  ;;  %1194 = vmatpush.bf16.msrb.mxu1 %v2459_v45  ;;  %v2842_v35 = vor.u32 %v3063_v5, %v2841_v52  ;;  %v2686_v43 = vor.u32 %v3021_v39, %v2683_v42  ;;  %v2809_v44 = vld [vmem:[#allocation3 + $0x5a0] sm:$0xf]  ;;  %v3045_v32 = vld [vmem:[#allocation3 + $0x564] sm:$0xf]  ;;  %v3015_v5 = vld [vmem:[#allocation3 + $0x46c] sm:$0xf0] }
  0xf4   :  { %v693_v31 = vmul.f32 %v3099_v46, %v682_v48  ;;  %v2810_v48 = vor.u32 %v3055_v18, %v2809_v44  ;;  %v2649_v52 = vld [vmem:[#allocation3 + $0x460] sm:$0xf]  ;;  %v2635_v42 = vld [vmem:[#allocation3 + $0x450] sm:$0xf0] }
  0xf5   :  { %1827 = vmatpush.bf16.msra.mxu3 %v2814_v2  ;;  %v782_v2 = vperm.slane %v3470_v56, 3 }
  0xf6   :  { %695 = vst [vmem:[%s3748_s5 + $0x8] sm:$0xff] %v693_v31  ;;  %v699_v40 = vpack.c.bf16 %v693_v31, %v693_v31  ;;  %1195 = vmatmul.bf16.vlgmr.msrb.gmra.mxu1 %v3429_v21  ;;  %v2779_v31 = vld [vmem:[#allocation3 + $0x570] sm:$0xf0] }
  0xf7   :  { %v2314_v36 = vld [vmem:[#allocation2] sm:$0xf]  ;;  %1797 = vmatpush.bf16.msra.mxu1 %v2842_v35  ;;  %v3013_v35 = vld [vmem:[#allocation3 + $0x464] sm:$0xf] }
  0xf8   :  { %701 = vst [vmem:[#allocation2 + $0x8] sm:$0xf] %v699_v40  ;;  %v2654_v47 = vor.u32 %v3013_v35, %v2651_v54  ;;  %v2745_v35 = vld [vmem:[#allocation3 + $0x520] sm:$0xf] }
  0xf9   :  { %1828 = vmatpush.bf16.msra.mxu3 %v2798_v33  ;;  %v3011_v33 = vld [vmem:[#allocation3 + $0x44c] sm:$0xf0]  ;;  %v2746_v38 = vor.u32 %v3039_v14, %v2745_v35  ;;  %v3026_v35 = vld [vmem:[#allocation3 + $0x4cc] sm:$0xf] }
  0xfb   :  { %1798 = vmatpush.bf16.msra.mxu1 %v2826_v15 }
  0xff   :  { %v2934_v50 = vld [vmem:[#allocation2 + $0x4] sm:$0xf0]  ;;  %1799 = vmatpush.bf16.msra.mxu1 %v2810_v48 }
 0x100   :  { %v2315_v55 = vor.u32 %v2934_v50, %v2314_v36 }
 0x102   :  { %1125 = vmatmul.bf16.vlgmr.msra.gmra.mxu0 %v2315_v55  ;;  %1153 = vmatmul.bf16.vlgmr.msra.gmra.mxu2 %v2315_v55 }
 0x103   :  { %1783 = vmatpush.bf16.msra.mxu0 %v2714_v49  ;;  %1811 = vmatpush.bf16.msra.mxu2 %v2718_v17  ;;  %v3041_v49 = vld [vmem:[#allocation3 + $0x544] sm:$0xf] }
 0x107   :  { %1784 = vmatpush.bf16.msra.mxu0 %v2698_v16  ;;  %1812 = vmatpush.bf16.msra.mxu2 %v2702_v22 }
 0x10b   :  { %1785 = vmatpush.bf16.msra.mxu0 %v2682_v10  ;;  %1813 = vmatpush.bf16.msra.mxu2 %v2686_v43  ;;  %v3009_v10 = vld [vmem:[#allocation3 + $0x444] sm:$0xf] }
 0x112   :  { %1181 = vmatmul.bf16.vlgmr.msrb.gmra.mxu0 %v2315_v55  ;;  %1209 = vmatmul.bf16.vlgmr.msrb.gmra.mxu2 %v2315_v55  ;;  %v2782_v55 = vor.u32 %v3045_v32, %v2779_v31 }
 0x114   :  { %1829 = vmatpush.bf16.msra.mxu3 %v2782_v55 }
 0x153   :  { %v1140_v59 = vpop.f32.mrf.mxu1 }
 0x156   :  { %v1168_v4 = vpop.f32.mrf.mxu3 }
 0x15b   :  { %v1142_v9 = vpop.f32.mrf.mxu1 }
 0x15e   :  { %v1170_v36 = vpop.f32.mrf.mxu3 }
 0x16f   :  { %v1224_v34 = vpop.f32.mrf.mxu3 }
 0x173   :  { %v1196_v0 = vpop.f32.mrf.mxu1 }
 0x17b   :  { %v1198_v32 = vpop.f32.mrf.mxu1 }
 0x17f   :  { %v1126_v21 = vpop.f32.mrf.mxu0 }
 0x180   :  { %v1127_v61 = vadd.f32 %v1126_v21, %v779_v60  ;;  %v3017_v21 = vld [vmem:[#allocation3 + $0x484] sm:$0xf] }
 0x181   :  { %v2670_v53 = vor.u32 %v3017_v21, %v2667_v8 }
 0x182   :  { %v1141_v12 = vadd.f32 %v1140_v59, %v1127_v61 }
 0x183   :  { %1814 = vmatpush.bf16.msra.mxu2 %v2670_v53  ;;  %v3033_v53 = vld [vmem:[#allocation3 + $0x504] sm:$0xf] }
 0x184   :  { %v2578_v7 = vmul.f32 -1.442695, %v1141_v12  ;;  %v3051_v12 = vld [vmem:[#allocation3 + $0x58c] sm:$0xf0] }
 0x185   :  { %v1154_v51 = vpop.f32.mrf.mxu2 }
 0x186   :  { %3100 = vpow2.f32 %v2578_v7  ;;  %v1155_v26 = vadd.f32 %v1154_v51, %v780_v24 }
 0x187   :  { %v1128_v20 = vpop.f32.mrf.mxu0  ;;  %1815 = vmatpush.bf16.msra.mxu2 %v2654_v47 }
 0x188   :  { %v1169_v28 = vadd.f32 %v1168_v4, %v1155_v26  ;;  %v1129_v29 = vadd.f32 %v1128_v20, %v779_v60  ;;  %v2666_v60 = vor.u32 %v3019_v58, %v2665_v57  ;;  %v2794_v4 = vor.u32 %v3051_v12, %v2793_v63  ;;  %v2731_v12 = vld [vmem:[#allocation3 + $0x510] sm:$0xf0] }
 0x18a   :  { %v2580_v11 = vmul.f32 -1.442695, %v1169_v28  ;;  %v1143_v41 = vadd.f32 %v1142_v9, %v1129_v29  ;;  %1786 = vmatpush.bf16.msra.mxu0 %v2666_v60  ;;  %v2650_v9 = vor.u32 %v3015_v5, %v2649_v52  ;;  %1800 = vmatpush.bf16.msra.mxu1 %v2794_v4  ;;  %v2747_v28 = vld [vmem:[#allocation3 + $0x530] sm:$0xf0]  ;;  %v2638_v60 = vor.u32 %v3009_v10, %v2635_v42  ;;  %v3007_v4 = vld [vmem:[#allocation3 + $0x42c] sm:$0xf0] }
 0x18b   :  { %v2576_v42 = vld [vmem:[%s3745_s2 + $0x10] sm:$0xff] }
 0x18c   :  { %v3101_v45 = vpop.eup %3100  ;;  %3102 = vpow2.f32 %v2580_v11  ;;  %v2579_v46 = vmul.f32 -1.442695, %v1143_v41  ;;  %1816 = vmatpush.bf16.msra.mxu2 %v2638_v60 }
 0x18d   :  { %v3476_v40 = vadd.f32 1.0, %v3101_v45  ;;  %v1156_v50 = vpop.f32.mrf.mxu2  ;;  %v2761_v45 = vld [vmem:[#allocation3 + $0x540] sm:$0xf] }
 0x18e   :  { %3104 = vpow2.f32 %v2579_v46  ;;  %v1157_v59 = vadd.f32 %v1156_v50, %v780_v24  ;;  %v2763_v24 = vld [vmem:[#allocation3 + $0x550] sm:$0xf0]  ;;  %1787 = vmatpush.bf16.msra.mxu0 %v2650_v9  ;;  %1801 = vmatpush.bf16.msra.mxu1 %v2778_v19  ;;  %v3043_v46 = vld [vmem:[#allocation3 + $0x54c] sm:$0xf0]  ;;  %v2634_v50 = vor.u32 %v3011_v33, %v2633_v30  ;;  %v2601_v19 = vld [vmem:[#allocation3 + $0x400] sm:$0xf]  ;;  %v1226_v33 = vpop.f32.mrf.mxu3 }
 0x18f   :  { %3106 = vrcp.f32 %v3476_v40  ;;  %v1182_v61 = vpop.f32.mrf.mxu0  ;;  %v1249_v62 = vand.u32 2147483647, %v3476_v40  ;;  %v1251_v3 = vand.u32 2147483648, %v3476_v40  ;;  %v2766_v17 = vor.u32 %v3041_v49, %v2763_v24  ;;  %v3062_v49 = vld [vmem:[#allocation3 + $0x5ec] sm:$0xf] }
 0x190   :  { %v1171_v1 = vadd.f32 %v1170_v36, %v1157_v59  ;;  %v1183_v16 = vadd.f32 %v1182_v61, %v781_v37  ;;  %v2750_v36 = vor.u32 %v3037_v27, %v2747_v28  ;;  %v2762_v61 = vor.u32 %v3043_v46, %v2761_v45  ;;  %v2851_v24 = vld [vmem:[#allocation3 + $0x5f8] sm:$0xf0]  ;;  %v2619_v9 = vld [vmem:[#allocation3 + $0x430] sm:$0xf0] }
 0x191   :  { %1830 = vmatpush.bf16.msra.mxu3 %v2766_v17  ;;  %v3495_v25 = vor.u32 1.1754944e-38, %v1251_v3  ;;  %vm3498_vm8 = vcmp.eq.f32.partialorder %v1249_v62, 8.507059e+37  ;;  %vm1245_vm10 = vweird.f32 %v3476_v40  ;;  %v2617_v3 = vld [vmem:[#allocation3 + $0x420] sm:$0xf]  ;;  %v3005_v17 = vld [vmem:[#allocation3 + $0x424] sm:$0xf] }
 0x192   :  { %v3103_v6 = vpop.eup %3102  ;;  %v2581_v7 = vmul.f32 -1.442695, %v1171_v1  ;;  %v1197_v44 = vadd.f32 %v1196_v0, %v1183_v16  ;;  %1788 = vmatpush.bf16.msra.mxu0 %v2634_v50  ;;  %1802 = vmatpush.bf16.msra.mxu1 %v2762_v61  ;;  %v3545_v16 = vld [vmem:[#allocation3 + $0x5d8] sm:$0xf0]  ;;  %v2603_v30 = vld [vmem:[#allocation3 + $0x410] sm:$0xf0] }
 0x193   :  { %v3484_v51 = vadd.f32 1.0, %v3103_v6  ;;  %v2723_v50 = vld [vmem:[#allocation3 + $0x4f8] sm:$0xf0]  ;;  %v2705_v1 = vld [vmem:[#allocation3 + $0x4c8] sm:$0xf] }
 0x194   :  { %v3105_v26 = vpop.eup %3104  ;;  %3108 = vpow2.f32 %v2581_v7 }
 0x195   :  { %v3487_v20 = vpop.eup %3106  ;;  %3110 = vrcp.f32 %v3484_v51  ;;  %v3490_v22 = vadd.f32 1.0, %v3105_v26  ;;  %v1210_v23 = vpop.f32.mrf.mxu2  ;;  %v1289_v15 = vand.u32 2147483648, %v3484_v51  ;;  %v1287_v39 = vand.u32 2147483647, %v3484_v51  ;;  %1831 = vmatpush.bf16.msra.mxu3 %v2750_v36  ;;  %v3540_v26 = vld [vmem:[#allocation3 + $0x5cc] sm:$0xf] }
 0x196   :  { %v1241_v29 = vmul.f32 %v3487_v20, %v3476_v40  ;;  %v1211_v11 = vadd.f32 %v1210_v23, %v782_v2  ;;  %vm1246_vm9 = vweird.f32 %v3487_v20  ;;  %vm1283_vm13 = vweird.f32 %v3484_v51  ;;  %v3003_v23 = vld [vmem:[#allocation3 + $0x40c] sm:$0xf0]  ;;  %v3030_v36 = vld [vmem:[#allocation3 + $0x4ec] sm:$0xf]  ;;  %1803 = vmatpush.bf16.msra.mxu1 %v2746_v38 }
 0x197   :  { %3112 = vrcp.f32 %v3490_v22  ;;  %v1184_v41 = vpop.f32.mrf.mxu0  ;;  %v1266_v31 = vand.u32 2147483648, %v3490_v22  ;;  %v3508_v58 = vor.u32 1.1754944e-38, %v1289_v15  ;;  %v1264_v59 = vand.u32 2147483647, %v3490_v22  ;;  %vm3529_vm12 = vmor %vm1245_vm10, %vm1246_vm9  ;;  %v3553_v15 = vld [vmem:[#allocation3 + $0x404] sm:$0xf] }
 0x198   :  { %v1242_v43 = vsub.f32 1.0, %v1241_v29  ;;  %v1185_v18 = vadd.f32 %v1184_v41, %v781_v37  ;;  %v1225_v48 = vadd.f32 %v1224_v34, %v1211_v11  ;;  %vm3519_vm11 = vcmp.eq.f32.partialorder %v1287_v39, 8.507059e+37 }
 0x199   :  { %3114 = vtanh.f32 %v1197_v44  ;;  %v3533_v6 = vor.u32 1.1754944e-38, %v1266_v31  ;;  %vm1260_vm15 = vweird.f32 %v3490_v22  ;;  %v2734_v34 = vor.u32 %v3033_v53, %v2731_v12  ;;  %v2721_v44 = vld [vmem:[#allocation3 + $0x4e8] sm:$0xf] }
 0x19a   :  { %v3109_v55 = vpop.eup %3108  ;;  %v1243_v57 = vmul.f32 %v3487_v20, %v1242_v43  ;;  %v2582_v8 = vmul.f32 -1.442695, %v1225_v48  ;;  %v1199_v37 = vadd.f32 %v1198_v32, %v1185_v18  ;;  %v2854_v39 = vor.u32 %v3062_v49, %v2851_v24  ;;  %v3032_v18 = vld [vmem:[#allocation3 + $0x4f4] sm:$0xf0]  ;;  %v3054_v24 = vld [vmem:[#allocation3 + $0x5ac] sm:$0xf] }
 0x19b   :  { %v3511_v0 = vpop.eup %3110  ;;  %v3513_v21 = vadd.f32 1.0, %v3109_v55  ;;  %v2618_v11 = vor.u32 %v3007_v4, %v2617_v3  ;;  %v2622_v41 = vor.u32 %v3005_v17, %v2619_v9  ;;  %vm3560_vm0 = vcmp.eq.f32.partialorder %v1264_v59, 8.507059e+37  ;;  %1832 = vmatpush.bf16.msra.mxu3 %v2734_v34  ;;  %v3064_v49 = vld [vmem:[#allocation3 + $0x5f4] sm:$0xf0]  ;;  %v2819_v3 = vld [vmem:[#allocation3 + $0x5b8] sm:$0xf0] }
 0x19c   :  { %v1279_v62 = vmul.f32 %v3511_v0, %v3484_v51  ;;  %v1244_v63 = vadd.f32 %v3487_v20, %v1243_v57  ;;  %vm1284_vm14 = vweird.f32 %v3511_v0  ;;  %v2838_v46 = vor.u32 %v3540_v26, %v3545_v16  ;;  %v3028_v9 = vld [vmem:[#allocation3 + $0x4d4] sm:$0xf0]  ;;  %v3050_v16 = vld [vmem:[#allocation3 + $0x58c] sm:$0xf]  ;;  %v2999_v34 = vld [vmem:[#allocation2 + $0x4] sm:$0xf] }
 0x19d   :  { %v3523_v52 = vpop.eup %3112  ;;  %3116 = vrcp.f32 %v3513_v21  ;;  %v1304_v5 = vand.u32 2147483648, %v3513_v21  ;;  %v1212_v7 = vpop.f32.mrf.mxu2  ;;  %vm3570_vm1 = vmor %vm1283_vm13, %vm1284_vm14  ;;  %1789 = vmatpush.bf16.msra.mxu0 %v2618_v11  ;;  %v2602_v48 = vor.u32 %v3003_v23, %v2601_v19  ;;  %v2606_v31 = vor.u32 %v3553_v15, %v2603_v30  ;;  %1817 = vmatpush.bf16.msra.mxu2 %v2622_v41  ;;  %v3060_v26 = vld [vmem:[#allocation3 + $0x5d4] sm:$0xf0]  ;;  %v2803_v19 = vld [vmem:[#allocation3 + $0x598] sm:$0xf0] }
 0x19e   :  { %v1280_v54 = vsub.f32 1.0, %v1279_v62  ;;  %v1256_v47 = vmul.f32 %v3523_v52, %v3490_v22  ;;  %v1248_v13 = vsel %vm3529_vm12, %v3487_v20, %v1244_v63  ;;  %3118 = vpow2.f32 %v2582_v8  ;;  %v2729_v8 = vld [vmem:[#allocation3 + $0x500] sm:$0xf] }
 0x19f   :  { %3120 = vtanh.f32 %v1199_v37  ;;  %v1253_v20 = vsel %vm3498_vm8, %v3495_v25, %v1248_v13  ;;  %v1213_v29 = vadd.f32 %v1212_v7, %v782_v2  ;;  %v3115_v10 = vpop.eup %3114  ;;  %vm1261_vm2 = vweird.f32 %v3523_v52  ;;  %1881 = vmatpush.bf16.msrb.mxu3 %v2854_v39  ;;  %v3035_v37 = vld [vmem:[#allocation3 + $0x50c] sm:$0xf0]  ;;  %v3016_v7 = vld [vmem:[#allocation3 + $0x474] sm:$0xf0] }
 0x1a0   :  { %v1281_v27 = vmul.f32 %v3511_v0, %v1280_v54  ;;  %v1257_v28 = vsub.f32 1.0, %v1256_v47  ;;  %v1302_v60 = vand.u32 2147483647, %v3513_v21  ;;  %v2722_v12 = vor.u32 %v3032_v18, %v2721_v44  ;;  %vm3596_vm3 = vmor %vm1260_vm15, %vm1261_vm2  ;;  %v2707_v54 = vld [vmem:[#allocation3 + $0x4d8] sm:$0xf0] }
 0x1a1   :  { %v1227_v2 = vadd.f32 %v1226_v33, %v1213_v29  ;;  %v1350_v40 = vmul.f32 %v3115_v10, %v1253_v20  ;;  %1790 = vmatpush.bf16.msra.mxu0 %v2602_v48  ;;  %v3602_v47 = vld [vmem:[#allocation3 + $0x5c8] sm:$0xf]  ;;  %1818 = vmatpush.bf16.msra.mxu2 %v2606_v31  ;;  %vm1298_vm5 = vweird.f32 %v3513_v21  ;;  %v2730_v23 = vor.u32 %v3035_v37, %v2729_v8  ;;  %v3022_v20 = vld [vmem:[#allocation3 + $0x4ac] sm:$0xf]  ;;  %v2691_v33 = vld [vmem:[#allocation3 + $0x4b8] sm:$0xf0] }
 0x1a2   :  { %v1282_v43 = vadd.f32 %v3511_v0, %v1281_v27  ;;  %v1258_v25 = vmul.f32 %v3523_v52, %v1257_v28  ;;  %v2689_v27 = vld [vmem:[#allocation3 + $0x4a8] sm:$0xf]  ;;  %v3024_v28 = vld [vmem:[#allocation3 + $0x4b4] sm:$0xf0]  ;;  %v1305_v29 = vor.u32 1.1754944e-38, %v1304_v5  ;;  %v2822_v30 = vor.u32 %v3054_v24, %v2819_v3 }
 0x1a3   :  { %v3564_v32 = vpop.eup %3116  ;;  %v2583_v53 = vmul.f32 -1.442695, %v1227_v2  ;;  %1882 = vmatpush.bf16.msrb.mxu3 %v2838_v46  ;;  %1804 = vmatpush.bf16.msra.mxu1 %v2730_v23  ;;  %v2706_v5 = vor.u32 %v3028_v9, %v2705_v1  ;;  %v2710_v10 = vor.u32 %v3026_v35, %v2707_v54  ;;  %vm1303_vm7 = vcmp.eq.f32.partialorder %v1302_v60, 8.507059e+37  ;;  %v3056_v2 = vld [vmem:[#allocation3 + $0x5b4] sm:$0xf0] }
 0x1a4   :  { %v3119_v55 = vpop.eup %3118  ;;  %v1294_v51 = vmul.f32 %v3564_v32, %v3513_v21  ;;  %v1286_v57 = vsel %vm3570_vm1, %v3511_v0, %v1282_v43  ;;  %v1259_v59 = vadd.f32 %v3523_v52, %v1258_v25  ;;  %v2849_v0 = vld [vmem:[#allocation3 + $0x5e8] sm:$0xf]  ;;  %vm1299_vm4 = vweird.f32 %v3564_v32  ;;  %v2595_v43 = vld [vmem:[#allocation2 + $0x8] sm:$0xf0]  ;;  %v3046_v46 = vld [vmem:[#allocation3 + $0x56c] sm:$0xf] }
 0x1a5   :  { %v3585_v61 = vpop.eup %3120  ;;  %v1291_v62 = vsel %vm3519_vm11, %v3508_v58, %v1286_v57  ;;  %v3590_v63 = vadd.f32 1.0, %v3119_v55  ;;  %v2726_v58 = vor.u32 %v3030_v36, %v2723_v50  ;;  %1839 = vmatpush.bf16.msrb.mxu0 %v2722_v12  ;;  %v2850_v15 = vor.u32 %v3064_v49, %v2849_v0  ;;  %vm3625_vm6 = vmor %vm1298_vm5, %vm1299_vm4  ;;  %v2817_v21 = vld [vmem:[#allocation3 + $0x5a8] sm:$0xf]  ;;  %v2787_v48 = vld [vmem:[#allocation3 + $0x578] sm:$0xf0] }
 0x1a6   :  { %v1295_v4 = vsub.f32 1.0, %v1294_v51  ;;  %v1348_v17 = vmul.f32 %v2576_v42, %v1291_v62  ;;  %v1263_v22 = vsel %vm3596_vm3, %v3523_v52, %v1259_v59  ;;  %v2834_v42 = vor.u32 %v3060_v26, %v3602_v47  ;;  %v2673_v31 = vld [vmem:[#allocation3 + $0x488] sm:$0xf]  ;;  %v3020_v51 = vld [vmem:[#allocation3 + $0x494] sm:$0xf0] }
 0x1a7   :  { %3122 = vrcp.f32 %v3590_v63  ;;  %1867 = vmatpush.bf16.msrb.mxu2 %v2726_v58  ;;  %v1268_v11 = vsel %vm3560_vm0, %v3533_v6, %v1263_v22  ;;  %1853 = vmatpush.bf16.msrb.mxu1 %v2850_v15  ;;  %v2806_v6 = vor.u32 %v3050_v16, %v2803_v19  ;;  %v2690_v56 = vor.u32 %v3024_v28, %v2689_v27  ;;  %v3018_v57 = vld [vmem:[#allocation3 + $0x48c] sm:$0xf]  ;;  %v2675_v59 = vld [vmem:[#allocation3 + $0x498] sm:$0xf0]  ;;  %v2801_v62 = vld [vmem:[#allocation3 + $0x588] sm:$0xf] }
 0x1a8   :  { %v1296_v13 = vmul.f32 %v3564_v32, %v1295_v4  ;;  %v1352_v14 = vadd.f32 %v1350_v40, %v1348_v17  ;;  %3124 = vpow2.f32 %v2583_v53  ;;  %1883 = vmatpush.bf16.msrb.mxu3 %v2822_v30  ;;  %v2694_v18 = vor.u32 %v3022_v20, %v2691_v33  ;;  %v3052_v49 = vld [vmem:[#allocation3 + $0x594] sm:$0xf0]  ;;  %v3042_v24 = vld [vmem:[#allocation3 + $0x54c] sm:$0xf]  ;;  %v2771_v17 = vld [vmem:[#allocation3 + $0x558] sm:$0xf0] }
 0x1a9   :  { %1840 = vmatpush.bf16.msrb.mxu0 %v2706_v5  ;;  %v3635_v45 = vor.u32 %v2999_v34, %v2595_v43  ;;  %v1351_v55 = vmul.f32 %v3585_v61, %v1268_v11  ;;  %v1327_v60 = vand.u32 2147483647, %v3590_v63  ;;  %v1329_v8 = vand.u32 2147483648, %v3590_v63  ;;  %v2657_v40 = vld [vmem:[#allocation3 + $0x468] sm:$0xf] }
 0x1aa   :  { %2586 = vst [vmem:[%s3749_s6 + $0x10] sm:$0xff] %v1352_v14  ;;  %v1297_v52 = vadd.f32 %v3564_v32, %v1296_v13  ;;  %3126 = vtanh.f32 %v1352_v14  ;;  %v2818_v61 = vor.u32 %v3056_v2, %v2817_v21  ;;  %v2790_v0 = vor.u32 %v3046_v46, %v2787_v48  ;;  %v3014_v1 = vld [vmem:[#allocation3 + $0x46c] sm:$0xf]  ;;  %v2659_v9 = vld [vmem:[#allocation3 + $0x478] sm:$0xf0] }
 0x1ab   :  { %1868 = vmatpush.bf16.msrb.mxu2 %v2710_v10  ;;  %1833 = vmatmul.bf16.vlgmr.msra.gmra.mxu3 %v3635_v45  ;;  %v2674_v3 = vor.u32 %v3020_v51, %v2673_v31  ;;  %v2678_v4 = vor.u32 %v3018_v57, %v2675_v59  ;;  %vm1323_vm9 = vweird.f32 %v3590_v63  ;;  %vm3656_vm10 = vcmp.eq.f32.partialorder %v1327_v60, 8.507059e+37  ;;  %v2785_v26 = vld [vmem:[#allocation3 + $0x568] sm:$0xf]  ;;  %v3048_v16 = vld [vmem:[#allocation3 + $0x574] sm:$0xf0] }
 0x1ac   :  { %v1301_v25 = vsel %vm3625_vm6, %v3564_v32, %v1297_v52  ;;  %1805 = vmatmul.bf16.vlgmr.msra.gmra.mxu1 %v3635_v45  ;;  %1884 = vmatpush.bf16.msrb.mxu3 %v2806_v6  ;;  %v1330_v13 = vor.u32 1.1754944e-38, %v1329_v8  ;;  %v2802_v14 = vor.u32 %v3052_v49, %v2801_v62  ;;  %v2774_v22 = vor.u32 %v3042_v24, %v2771_v17  ;;  %v3038_v27 = vld [vmem:[#allocation3 + $0x52c] sm:$0xf]  ;;  %v2755_v28 = vld [vmem:[#allocation3 + $0x538] sm:$0xf0] }
 0x1ad   :  { %v3633_v38 = vpop.eup %3122  ;;  %v1306_v44 = vsel %vm1303_vm7, %v1305_v29, %v1301_v25  ;;  %1854 = vmatpush.bf16.msrb.mxu1 %v2834_v42  ;;  %1841 = vmatpush.bf16.msrb.mxu0 %v2690_v56  ;;  %v2658_v19 = vor.u32 %v3016_v7, %v2657_v40  ;;  %v2662_v23 = vor.u32 %v3014_v1, %v2659_v9  ;;  %v2641_v20 = vld [vmem:[#allocation3 + $0x448] sm:$0xf]  ;;  %v3012_v29 = vld [vmem:[#allocation3 + $0x454] sm:$0xf0]  ;;  %v3010_v15 = vld [vmem:[#allocation3 + $0x44c] sm:$0xf] }
 0x1ae   :  { %v3125_v36 = vpop.eup %3124  ;;  %v1319_v32 = vmul.f32 %v3633_v38, %v3590_v63  ;;  %vm1324_vm8 = vweird.f32 %v3633_v38  ;;  %v2643_v30 = vld [vmem:[#allocation3 + $0x458] sm:$0xf0]  ;;  %v2758_v5 = vor.u32 %v3038_v27, %v2755_v28  ;;  %v2769_v10 = vld [vmem:[#allocation3 + $0x548] sm:$0xf]  ;;  %v3044_v42 = vld [vmem:[#allocation3 + $0x554] sm:$0xf0]  ;;  %v2642_v25 = vor.u32 %v3012_v29, %v2641_v20 }
 0x1af   :  { %v3642_v37 = vadd.f32 1.0, %v3125_v36  ;;  %1869 = vmatpush.bf16.msrb.mxu2 %v2694_v18  ;;  %vm3663_vm11 = vmor %vm1323_vm9, %vm1324_vm8  ;;  %v3034_v43 = vld [vmem:[#allocation3 + $0x50c] sm:$0xf]  ;;  %v2646_v6 = vor.u32 %v3010_v15, %v2643_v30  ;;  %v2739_v56 = vld [vmem:[#allocation3 + $0x518] sm:$0xf0]  ;;  %v2770_v31 = vor.u32 %v3044_v42, %v2769_v10 }
 0x1b0   :  { %v1320_v53 = vsub.f32 1.0, %v1319_v32  ;;  %1885 = vmatpush.bf16.msrb.mxu3 %v2790_v0  ;;  %v3127_v63 = vpop.eup %3126  ;;  %v2625_v21 = vld [vmem:[#allocation3 + $0x428] sm:$0xf]  ;;  %v3008_v2 = vld [vmem:[#allocation3 + $0x434] sm:$0xf0] }
 0x1b1   :  { %v2577_v39 = vld [vmem:[%s3745_s2 + $0x18] sm:$0xff]  ;;  %3128 = vrcp.f32 %v3642_v37  ;;  %1855 = vmatpush.bf16.msrb.mxu1 %v2818_v61  ;;  %1842 = vmatpush.bf16.msrb.mxu0 %v2674_v3  ;;  %v2627_v46 = vld [vmem:[#allocation3 + $0x438] sm:$0xf0]  ;;  %v1344_v48 = vand.u32 2147483648, %v3642_v37  ;;  %v1342_v32 = vand.u32 2147483647, %v3642_v37  ;;  %vm1338_vm13 = vweird.f32 %v3642_v37 }
 0x1b2   :  { %v1349_v50 = vmul.f32 %v2577_v39, %v1306_v44  ;;  %v1321_v58 = vmul.f32 %v3633_v38, %v1320_v53  ;;  %v2786_v39 = vor.u32 %v3048_v16, %v2785_v26  ;;  %v3006_v18 = vld [vmem:[#allocation3 + $0x42c] sm:$0xf]  ;;  %v2753_v57 = vld [vmem:[#allocation3 + $0x528] sm:$0xf]  ;;  %v3040_v59 = vld [vmem:[#allocation3 + $0x534] sm:$0xf0] }
 0x1b3   :  { %1870 = vmatpush.bf16.msrb.mxu2 %v2678_v4  ;;  %v2630_v51 = vor.u32 %v3006_v18, %v2627_v46  ;;  %v2609_v60 = vld [vmem:[#allocation3 + $0x408] sm:$0xf]  ;;  %v3004_v62 = vld [vmem:[#allocation3 + $0x414] sm:$0xf0]  ;;  %v3002_v53 = vld [vmem:[#allocation3 + $0x40c] sm:$0xf]  ;;  %v2754_v49 = vor.u32 %v3040_v59, %v2753_v57 }
 0x1b4   :  { %v3646_v12 = vadd.f32 %v1351_v55, %v1349_v50  ;;  %v1322_v54 = vadd.f32 %v3633_v38, %v1321_v58  ;;  %1886 = vmatpush.bf16.msrb.mxu3 %v2774_v22  ;;  %v2742_v50 = vor.u32 %v3034_v43, %v2739_v56  ;;  %v2626_v55 = vor.u32 %v3008_v2, %v2625_v21  ;;  %v2737_v40 = vld [vmem:[#allocation3 + $0x508] sm:$0xf]  ;;  %v3036_v7 = vld [vmem:[#allocation3 + $0x514] sm:$0xf0] }
 0x1b5   :  { %1856 = vmatpush.bf16.msrb.mxu1 %v2802_v14  ;;  %1843 = vmatpush.bf16.msrb.mxu0 %v2658_v19  ;;  %v1345_v61 = vor.u32 1.1754944e-38, %v1344_v48  ;;  %vm1343_vm15 = vcmp.eq.f32.partialorder %v1342_v32, 8.507059e+37  ;;  %v2610_v4 = vor.u32 %v3004_v62, %v2609_v60  ;;  %v2738_v1 = vor.u32 %v3036_v7, %v2737_v40  ;;  %v3689_v47 = vld [vmem:[%s3747_s4 + $0x8] sm:$0xf] }
 0x1b6   :  { %2587 = vst [vmem:[%s3749_s6 + $0x18] sm:$0xff] %v3646_v12  ;;  %v1326_v52 = vsel %vm3663_vm11, %v3633_v38, %v1322_v54  ;;  %3130 = vtanh.f32 %v3646_v12  ;;  %v2611_v12 = vld [vmem:[#allocation3 + $0x418] sm:$0xf0]  ;;  %v1447_v56 = vperm.slane %v3689_v47, 2  ;;  %v1448_v21 = vperm.slane %v3689_v47, 3 }
 0x1b7   :  { %v3129_v33 = vpop.eup %3128  ;;  %v1331_v34 = vsel %vm3656_vm10, %v1330_v13, %v1326_v52  ;;  %1871 = vmatpush.bf16.msrb.mxu2 %v2662_v23  ;;  %v2614_v17 = vor.u32 %v3002_v53, %v2611_v12  ;;  %v1445_v13 = vperm.slane %v3689_v47, 0 }
 0x1b8   :  { %v1356_v11 = vmul.f32 %v3127_v63, %v1331_v34  ;;  %v1334_v41 = vmul.f32 %v3129_v33, %v3642_v37  ;;  %vm1339_vm12 = vweird.f32 %v3129_v33  ;;  %1887 = vmatpush.bf16.msrb.mxu3 %v2758_v5 }
 0x1b9   :  { %1857 = vmatpush.bf16.msrb.mxu1 %v2786_v39  ;;  %1844 = vmatpush.bf16.msrb.mxu0 %v2642_v25  ;;  %vm1340_vm14 = vmor %vm1338_vm13, %vm1339_vm12 }
 0x1ba   :  { %2584 = vst [vmem:[%s3748_s5 + $0x10] sm:$0xff] %v1356_v11  ;;  %v1364_v38 = vpack.c.bf16 %v1356_v11, %v1356_v11  ;;  %v1335_v44 = vsub.f32 1.0, %v1334_v41 }
 0x1bb   :  { %1872 = vmatpush.bf16.msrb.mxu2 %v2646_v6 }
 0x1bc   :  { %1366 = vst [vmem:[#allocation2] sm:$0xf] %v1364_v38  ;;  %v1336_v36 = vmul.f32 %v3129_v33, %v1335_v44  ;;  %1888 = vmatpush.bf16.msrb.mxu3 %v2742_v50  ;;  %v3131_v24 = vpop.eup %3130 }
 0x1bd   :  { %1858 = vmatpush.bf16.msrb.mxu1 %v2770_v31  ;;  %1845 = vmatpush.bf16.msrb.mxu0 %v2626_v55 }
 0x1be   :  { %v1337_v8 = vadd.f32 %v3129_v33, %v1336_v36 }
 0x1bf   :  { %1873 = vmatpush.bf16.msrb.mxu2 %v2630_v51  ;;  %1889 = vmatmul.bf16.vlgmr.msrb.gmra.mxu3 %v3635_v45 }
 0x1c0   :  { %v1341_v0 = vsel %vm1340_vm14, %v3129_v33, %v1337_v8 }
 0x1c1   :  { %v1346_v3 = vsel %vm1343_vm15, %v1345_v61, %v1341_v0  ;;  %1859 = vmatpush.bf16.msrb.mxu1 %v2754_v49  ;;  %1846 = vmatpush.bf16.msrb.mxu0 %v2610_v4 }
 0x1c2   :  { %v1357_v37 = vmul.f32 %v3131_v24, %v1346_v3 }
 0x1c3   :  { %1874 = vmatpush.bf16.msrb.mxu2 %v2614_v17  ;;  %v2593_v9 = vld [vmem:[#allocation2] sm:$0xf] }
 0x1c4   :  { %2585 = vst [vmem:[%s3748_s5 + $0x18] sm:$0xff] %v1357_v37  ;;  %v1365_v58 = vpack.c.bf16 %v1357_v37, %v1357_v37 }
 0x1c5   :  { %1860 = vmatpush.bf16.msrb.mxu1 %v2738_v1 }
 0x1c6   :  { %1367 = vst [vmem:[#allocation2 + $0x8] sm:$0xf] %v1365_v58 }
 0x1c8   :  { %1861 = vmatmul.bf16.vlgmr.msrb.gmra.mxu1 %v3635_v45  ;;  %v1446_v45 = vperm.slane %v3689_v47, 1 }
 0x1cd   :  { %v3000_v35 = vld [vmem:[#allocation2 + $0x4] sm:$0xf0] }
 0x1ce   :  { %v2594_v54 = vor.u32 %v3000_v35, %v2593_v9 }
 0x1d0   :  { %1791 = vmatmul.bf16.vlgmr.msra.gmra.mxu0 %v2594_v54  ;;  %1819 = vmatmul.bf16.vlgmr.msra.gmra.mxu2 %v2594_v54 }
 0x1e0   :  { %1847 = vmatmul.bf16.vlgmr.msrb.gmra.mxu0 %v2594_v54  ;;  %1875 = vmatmul.bf16.vlgmr.msrb.gmra.mxu2 %v2594_v54 }
 0x229   :  { %v1806_v14 = vpop.f32.mrf.mxu1 }
 0x22e   :  { %v1834_v63 = vpop.f32.mrf.mxu3 }
 0x231   :  { %v1808_v20 = vpop.f32.mrf.mxu1 }
 0x236   :  { %v1836_v11 = vpop.f32.mrf.mxu3 }
 0x242   :  { %v1890_v36 = vpop.f32.mrf.mxu3 }
 0x245   :  { %v1862_v18 = vpop.f32.mrf.mxu1 }
 0x24d   :  { %v1792_v22 = vpop.f32.mrf.mxu0  ;;  %v1864_v1 = vpop.f32.mrf.mxu1 }
 0x24e   :  { %v1793_v26 = vadd.f32 %v1792_v22, %v1445_v13  ;;  %v1892_v22 = vpop.f32.mrf.mxu3 }
 0x250   :  { %v1807_v16 = vadd.f32 %v1806_v14, %v1793_v26 }
 0x252   :  { %v2857_v19 = vmul.f32 -1.442695, %v1807_v16 }
 0x253   :  { %v1820_v23 = vpop.f32.mrf.mxu2 }
 0x254   :  { %3132 = vpow2.f32 %v2857_v19  ;;  %v1821_v27 = vadd.f32 %v1820_v23, %v1446_v45  ;;  %v2855_v23 = vld [vmem:[%s3745_s2 + $0x20] sm:$0xff] }
 0x255   :  { %v1794_v28 = vpop.f32.mrf.mxu0 }
 0x256   :  { %v1835_v52 = vadd.f32 %v1834_v63, %v1821_v27  ;;  %v1795_v29 = vadd.f32 %v1794_v28, %v1445_v13 }
 0x258   :  { %v2859_v15 = vmul.f32 -1.442695, %v1835_v52  ;;  %v1809_v30 = vadd.f32 %v1808_v20, %v1795_v29 }
 0x25a   :  { %v3133_v33 = vpop.eup %3132  ;;  %3134 = vpow2.f32 %v2859_v15  ;;  %v2858_v34 = vmul.f32 -1.442695, %v1809_v30 }
 0x25b   :  { %v1904_v39 = vadd.f32 1.0, %v3133_v33  ;;  %v1822_v41 = vpop.f32.mrf.mxu2 }
 0x25c   :  { %3136 = vpow2.f32 %v2858_v34  ;;  %v1823_v5 = vadd.f32 %v1822_v41, %v1446_v45 }
 0x25d   :  { %3138 = vrcp.f32 %v1904_v39  ;;  %v1848_v42 = vpop.f32.mrf.mxu0  ;;  %vm1911_vm0 = vweird.f32 %v1904_v39  ;;  %v1915_v24 = vand.u32 2147483647, %v1904_v39  ;;  %v1917_v3 = vand.u32 2147483648, %v1904_v39 }
 0x25e   :  { %v1837_v10 = vadd.f32 %v1836_v11, %v1823_v5  ;;  %v1849_v31 = vadd.f32 %v1848_v42, %v1447_v56 }
 0x25f   :  { %vm1916_vm5 = vcmp.eq.f32.partialorder %v1915_v24, 8.507059e+37  ;;  %v1918_v13 = vor.u32 1.1754944e-38, %v1917_v3 }
 0x260   :  { %v3135_v43 = vpop.eup %3134  ;;  %v2860_v25 = vmul.f32 -1.442695, %v1837_v10  ;;  %v1863_v8 = vadd.f32 %v1862_v18, %v1849_v31 }
 0x261   :  { %v1942_v6 = vadd.f32 1.0, %v3135_v43 }
 0x262   :  { %v3137_v2 = vpop.eup %3136  ;;  %3140 = vpow2.f32 %v2860_v25 }
 0x263   :  { %v3139_v38 = vpop.eup %3138  ;;  %3142 = vrcp.f32 %v1942_v6  ;;  %v3695_v44 = vadd.f32 1.0, %v3137_v2  ;;  %v1876_v46 = vpop.f32.mrf.mxu2  ;;  %v1955_v49 = vand.u32 2147483648, %v1942_v6  ;;  %v1953_v58 = vand.u32 2147483647, %v1942_v6 }
 0x264   :  { %v1907_v48 = vmul.f32 %v3139_v38, %v1904_v39  ;;  %v1877_v32 = vadd.f32 %v1876_v46, %v1448_v21  ;;  %vm1912_vm1 = vweird.f32 %v3139_v38  ;;  %vm1949_vm4 = vweird.f32 %v1942_v6 }
 0x265   :  { %3144 = vrcp.f32 %v3695_v44  ;;  %v1850_v53 = vpop.f32.mrf.mxu0  ;;  %vm3705_vm2 = vmor %vm1911_vm0, %vm1912_vm1  ;;  %v1956_v14 = vor.u32 1.1754944e-38, %v1955_v49  ;;  %vm1954_vm7 = vcmp.eq.f32.partialorder %v1953_v58, 8.507059e+37  ;;  %vm1926_vm8 = vweird.f32 %v3695_v44 }
 0x266   :  { %v1908_v50 = vsub.f32 1.0, %v1907_v48  ;;  %v1891_v55 = vadd.f32 %v1890_v36, %v1877_v32  ;;  %v1851_v7 = vadd.f32 %v1850_v53, %v1447_v56  ;;  %v1930_v28 = vand.u32 2147483647, %v3695_v44 }
 0x267   :  { %v1932_v39 = vand.u32 2147483648, %v3695_v44 }
 0x268   :  { %v3141_v51 = vpop.eup %3140  ;;  %v1909_v57 = vmul.f32 %v3139_v38, %v1908_v50  ;;  %v2861_v62 = vmul.f32 -1.442695, %v1891_v55  ;;  %v1865_v16 = vadd.f32 %v1864_v1, %v1851_v7  ;;  %vm1931_vm13 = vcmp.eq.f32.partialorder %v1930_v28, 8.507059e+37 }
 0x269   :  { %v3143_v59 = vpop.eup %3142  ;;  %v3698_v60 = vadd.f32 1.0, %v3141_v51 }
 0x26a   :  { %v1945_v12 = vmul.f32 %v3143_v59, %v1942_v6  ;;  %v1910_v61 = vadd.f32 %v3139_v38, %v1909_v57  ;;  %vm1950_vm3 = vweird.f32 %v3143_v59 }
 0x26b   :  { %v3700_v0 = vpop.eup %3144  ;;  %3146 = vrcp.f32 %v3698_v60  ;;  %v1878_v4 = vpop.f32.mrf.mxu2  ;;  %vm1951_vm6 = vmor %vm1949_vm4, %vm1950_vm3  ;;  %v1970_v42 = vand.u32 2147483648, %v3698_v60  ;;  %v1968_v43 = vand.u32 2147483647, %v3698_v60  ;;  %vm1964_vm12 = vweird.f32 %v3698_v60 }
 0x26c   :  { %v1946_v17 = vsub.f32 1.0, %v1945_v12  ;;  %v1922_v40 = vmul.f32 %v3700_v0, %v3695_v44  ;;  %3148 = vpow2.f32 %v2861_v62  ;;  %v1914_v54 = vsel %vm3705_vm2, %v3139_v38, %v1910_v61 }
 0x26d   :  { %3150 = vtanh.f32 %v1863_v8  ;;  %v1879_v47 = vadd.f32 %v1878_v4, %v1448_v21  ;;  %v1919_v27 = vsel %vm1916_vm5, %v1918_v13, %v1914_v54  ;;  %vm1927_vm9 = vweird.f32 %v3700_v0 }
 0x26e   :  { %v1947_v9 = vmul.f32 %v3143_v59, %v1946_v17  ;;  %v1923_v35 = vsub.f32 1.0, %v1922_v40  ;;  %3152 = vtanh.f32 %v1865_v16  ;;  %vm1928_vm10 = vmor %vm1926_vm8, %vm1927_vm9  ;;  %v1933_v21 = vor.u32 1.1754944e-38, %v1932_v39 }
 0x26f   :  { %v1893_v63 = vadd.f32 %v1892_v22, %v1879_v47  ;;  %v1971_v18 = vor.u32 1.1754944e-38, %v1970_v42  ;;  %vm1969_vm15 = vcmp.eq.f32.partialorder %v1968_v43, 8.507059e+37 }
 0x270   :  { %v1948_v26 = vadd.f32 %v3143_v59, %v1947_v9  ;;  %v1924_v45 = vmul.f32 %v3700_v0, %v1923_v35 }
 0x271   :  { %v3147_v19 = vpop.eup %3146  ;;  %v2862_v11 = vmul.f32 -1.442695, %v1893_v63 }
 0x272   :  { %v3149_v20 = vpop.eup %3148  ;;  %v1960_v52 = vmul.f32 %v3147_v19, %v3698_v60  ;;  %v1952_v29 = vsel %vm1951_vm6, %v3143_v59, %v1948_v26  ;;  %v1925_v15 = vadd.f32 %v3700_v0, %v1924_v45  ;;  %vm1965_vm11 = vweird.f32 %v3147_v19 }
 0x273   :  { %v3151_v30 = vpop.eup %3150  ;;  %v1957_v33 = vsel %vm1954_vm7, %v1956_v14, %v1952_v29  ;;  %v1982_v34 = vadd.f32 1.0, %v3149_v20  ;;  %vm1966_vm14 = vmor %vm1964_vm12, %vm1965_vm11 }
 0x274   :  { %v1961_v41 = vsub.f32 1.0, %v1960_v52  ;;  %v2014_v5 = vmul.f32 %v2855_v23, %v1957_v33  ;;  %v2016_v10 = vmul.f32 %v3151_v30, %v1919_v27  ;;  %v1929_v56 = vsel %vm1928_vm10, %v3700_v0, %v1925_v15  ;;  %v3153_v46 = vpop.eup %3152 }
 0x275   :  { %3154 = vrcp.f32 %v1982_v34  ;;  %v1934_v44 = vsel %vm1931_vm13, %v1933_v21, %v1929_v56  ;;  %v1995_v8 = vand.u32 2147483648, %v1982_v34  ;;  %v1993_v53 = vand.u32 2147483647, %v1982_v34 }
 0x276   :  { %v1962_v25 = vmul.f32 %v3147_v19, %v1961_v41  ;;  %v2018_v6 = vadd.f32 %v2016_v10, %v2014_v5  ;;  %3156 = vpow2.f32 %v2862_v11  ;;  %v2017_v51 = vmul.f32 %v3153_v46, %v1934_v44 }
 0x277   :  { %vm1989_vm1 = vweird.f32 %v1982_v34  ;;  %v1996_v61 = vor.u32 1.1754944e-38, %v1995_v8  ;;  %vm1994_vm3 = vcmp.eq.f32.partialorder %v1993_v53, 8.507059e+37 }
 0x278   :  { %2865 = vst [vmem:[%s3749_s6 + $0x20] sm:$0xff] %v2018_v6  ;;  %v1963_v2 = vadd.f32 %v3147_v19, %v1962_v25  ;;  %3158 = vtanh.f32 %v2018_v6 }
 0x27a   :  { %v1967_v48 = vsel %vm1966_vm14, %v3147_v19, %v1963_v2 }
 0x27b   :  { %v3155_v31 = vpop.eup %3154  ;;  %v1972_v36 = vsel %vm1969_vm15, %v1971_v18, %v1967_v48 }
 0x27c   :  { %v3157_v32 = vpop.eup %3156  ;;  %v1985_v50 = vmul.f32 %v3155_v31, %v1982_v34  ;;  %vm1990_vm0 = vweird.f32 %v3155_v31 }
 0x27d   :  { %v1983_v57 = vadd.f32 1.0, %v3157_v32  ;;  %vm1991_vm2 = vmor %vm1989_vm1, %vm1990_vm0 }
 0x27e   :  { %v1986_v59 = vsub.f32 1.0, %v1985_v50  ;;  %v3159_v0 = vpop.eup %3158 }
 0x27f   :  { %v2856_v38 = vld [vmem:[%s3745_s2 + $0x28] sm:$0xff]  ;;  %3160 = vrcp.f32 %v1983_v57  ;;  %v2010_v7 = vand.u32 2147483648, %v1983_v57  ;;  %v2008_v58 = vand.u32 2147483647, %v1983_v57  ;;  %vm2004_vm5 = vweird.f32 %v1983_v57 }
 0x280   :  { %v2015_v55 = vmul.f32 %v2856_v38, %v1972_v36  ;;  %v1987_v62 = vmul.f32 %v3155_v31, %v1986_v59 }
 0x281   :  { %v2011_v9 = vor.u32 1.1754944e-38, %v2010_v7  ;;  %vm2009_vm7 = vcmp.eq.f32.partialorder %v2008_v58, 8.507059e+37 }
 0x282   :  { %v2019_v60 = vadd.f32 %v2017_v51, %v2015_v55  ;;  %v1988_v12 = vadd.f32 %v3155_v31, %v1987_v62 }
 0x284   :  { %2866 = vst [vmem:[%s3749_s6 + $0x28] sm:$0xff] %v2019_v60  ;;  %v1992_v49 = vsel %vm1991_vm2, %v3155_v31, %v1988_v12  ;;  %3162 = vtanh.f32 %v2019_v60 }
 0x285   :  { %v3161_v24 = vpop.eup %3160  ;;  %v1997_v3 = vsel %vm1994_vm3, %v1996_v61, %v1992_v49 }
 0x286   :  { %v2022_v4 = vmul.f32 %v3159_v0, %v1997_v3  ;;  %v2000_v17 = vmul.f32 %v3161_v24, %v1983_v57  ;;  %vm2005_vm4 = vweird.f32 %v3161_v24 }
 0x287   :  { %vm2006_vm6 = vmor %vm2004_vm5, %vm2005_vm4 }
 0x288   :  { %2863 = vst [vmem:[%s3748_s5 + $0x20] sm:$0xff] %v2022_v4  ;;  %v2001_v40 = vsub.f32 1.0, %v2000_v17 }
 0x28a   :  { %v2002_v37 = vmul.f32 %v3161_v24, %v2001_v40  ;;  %v3163_v54 = vpop.eup %3162 }
 0x28c   :  { %v2003_v1 = vadd.f32 %v3161_v24, %v2002_v37 }
 0x28e   :  { %v2007_v35 = vsel %vm2006_vm6, %v3161_v24, %v2003_v1 }
 0x28f   :  { %v2012_v47 = vsel %vm2009_vm7, %v2011_v9, %v2007_v35 }
 0x290   :  { %v2023_v13 = vmul.f32 %v3163_v54, %v2012_v47 }
 0x292   :  { %2864 = vst [vmem:[%s3748_s5 + $0x28] sm:$0xff] %v2023_v13 }
 0x293   :  { %2038 = vsyncpa [#allocation4], 1 }

</bundles_post_ra>
